<compile_context>
chip_gen: v5e
topology: v5e:2x2
jax: 0.10.0
libtpu: 0.0.40
codegen_flags: <defaults>
</compile_context>

<pallas_src>
import jax
import jax.numpy as jnp
from jax import lax
from jax.experimental import pallas as pl
from jax.experimental.pallas import tpu as pltpu  # noqa: F401  (kept for TPU-specific tuning hooks)


# ----------------------------------------------------------------------------
# Pallas kernel: the whole forward (all batch elements) in one invocation.
# ----------------------------------------------------------------------------
def entity_encoder_kernel(
    ctx_hid_ref,    # [B*T, D+H]   cat(context_emb, context_outputs), flattened batch
    ctx_embT_ref,   # [D, B*T]     context_emb, pre-transposed for the score matmul
    ent_emb_ref,    # [B*E, D]     embedded entities, flattened batch
    idx_ref,        # [R, 4] int32 packed indices: [ce_pos | kb_idx | kb_col | pad]
    attn_bias_ref,  # [B*E, B*T]   0 where attendable, -1e9 elsewhere
    nei_ref,        # [B*KE, B*KE] block-diagonal neighbour matrix
    w1_ref,         # [D+H, HP]    mlp1 weight, lane-padded
    b1_ref,         # [1, HP]
    waw2a_ref,      # [D, D+H]     [wa | w2[:D]]  (shared ent_emb LHS)
    w2b_ref,        # [H, H]       w2[D:]
    b2_ref,         # [1, H]
    wrel_ref,       # [H, (I+1)*HP]  [W_0^T | ... | W_{I-1}^T | W0], lane-padded blocks
    out_ce_ref,     # [B*CE, HP]
    out_kb_ref,     # [B*KE, HP]
):
    f32 = jnp.float32
    BT, _ = ctx_hid_ref.shape
    D = ctx_embT_ref.shape[0]
    HP = out_ce_ref.shape[1]
    BCE = out_ce_ref.shape[0]
    BE = ent_emb_ref.shape[0]
    BKE = out_kb_ref.shape[0]
    I_rel = wrel_ref.shape[1] // HP - 1

    ctx_hidden = ctx_hid_ref[...]                                        # [BT, D+H]

    # ---- context-entity branch: one-hot gather -> fused mlp1 (lane-padded) ---
    ce_pos = idx_ref[0:BCE, 0:1]                                         # -1 == masked
    oh_ce = (lax.broadcasted_iota(jnp.int32, (BCE, BT), 1) == ce_pos).astype(f32)
    gathered = jnp.dot(oh_ce, ctx_hidden, preferred_element_type=f32)    # [BCE, D+H]
    out_ce_ref[...] = jnp.maximum(
        jnp.dot(gathered, w1_ref[...], preferred_element_type=f32) + b1_ref[...], 0.0)

    # ---- entity branch: fused [wa | w2a] projection + align attention + mlp2 -
    proj = jnp.dot(ent_emb_ref[...], waw2a_ref[...],
                   preferred_element_type=f32)                           # [BE, D+H]
    q = proj[:, :D]
    scores = (jnp.dot(q, ctx_embT_ref[...], preferred_element_type=f32)
              + attn_bias_ref[...])                                      # [BE, BT]
    scores = scores - jnp.max(scores, axis=-1, keepdims=True)
    p = jnp.exp(scores)
    p = p / jnp.sum(p, axis=-1, keepdims=True)
    align = jnp.dot(p, ctx_hidden[:, :D], preferred_element_type=f32)    # [BE, D]
    ent_hidden = jnp.maximum(
        proj[:, D:] + jnp.dot(align, w2b_ref[...], preferred_element_type=f32)
        + b2_ref[...], 0.0)                                              # [BE, H]

    # ---- KB-entity branch ----------------------------------------------------
    kb_idx = idx_ref[0:BKE, 1:2]
    kb_col = idx_ref[0:BKE, 2:3]
    oh_kb = (lax.broadcasted_iota(jnp.int32, (BKE, BE), 1) == kb_idx).astype(f32)
    kb_init = jnp.dot(oh_kb, ent_hidden, preferred_element_type=f32)     # [BKE, H]

    # one fat matmul against [W_0^T | ... | W_{I-1}^T | W0]; every block is a
    # 128-aligned lane segment, so the relation select is a masked segment sum.
    all_proj = jnp.dot(kb_init, wrel_ref[...],
                       preferred_element_type=f32)                       # [BKE, (I+1)*HP]
    kb_left = all_proj[:, I_rel * HP:(I_rel + 1) * HP]                   # W0(kb_init)
    kb_state = (kb_col == 0).astype(f32) * all_proj[:, 0:HP]
    for r in range(1, I_rel):
        kb_state = kb_state + (kb_col == r).astype(f32) * all_proj[:, r * HP:(r + 1) * HP]

    nei = nei_ref[...]
    inv_nei = pl.reciprocal(jnp.maximum(jnp.sum(nei, axis=-1, keepdims=True), 1.0),
                            approx=True)
    kb_right = jnp.dot(nei, kb_state, preferred_element_type=f32) * inv_nei
    out_kb_ref[...] = jnp.maximum(kb_left + kb_right, 0.0)


# ----------------------------------------------------------------------------
# Wrapper: glue (embedding lookup, batch flattening, index packing, weight
# folding/padding — the weight prep would normally happen once at load time).
# ----------------------------------------------------------------------------
def entity_encoder_forward(context_emb, context_outputs, context_mask,
                           context_entity_pos, context_entity_mask,
                           entity, kb_entity, kb_entity_mask, kb_entity_col,
                           kb_entity_nei, params):
    f32 = jnp.float32
    B, T, D = context_emb.shape
    H = context_outputs.shape[-1]
    CE = context_entity_pos.shape[1]
    E = entity.shape[1]
    KE = kb_entity.shape[1]
    I = params["W"].shape[0]
    HP = ((H + 127) // 128) * 128          # lane-dense padded output width

    assert D == H, "EntityEncoder requires embedding_dim == hidden_size"
    assert params["w1"].shape == (D + H, H)   # rows ordered [context_emb ; context_outputs]
    assert params["w2"].shape == (D + H, H)   # rows ordered [entity_emb ; align]

    # -- flatten batch into rows (single grid-less kernel invocation) ----------
    ctx_hidden = jnp.concatenate([context_emb, context_outputs], axis=-1)
    ctx_hidden = ctx_hidden.reshape(B * T, D + H).astype(f32)
    ctx_embT = context_emb.reshape(B * T, D).T.astype(f32)
    ent_emb = jnp.take(params["emb_table"], entity, axis=0).reshape(B * E, D).astype(f32)

    # -- consolidate all small index/mask tensors into one int32 array ---------
    # masked entries get index -1 so the in-kernel iota compare yields a zero row
    ce_pos = jnp.where(context_entity_mask.reshape(-1) > 0,
                       context_entity_pos.reshape(-1) + jnp.repeat(jnp.arange(B) * T, CE),
                       -1).astype(jnp.int32)
    kb_idx = jnp.where(kb_entity_mask.reshape(-1) > 0,
                       kb_entity.reshape(-1) + jnp.repeat(jnp.arange(B) * E, KE),
                       -1).astype(jnp.int32)
    kb_col = kb_entity_col.reshape(-1).astype(jnp.int32)
    R = max(B * CE, B * KE)
    idx_pack = jnp.full((R, 4), -1, jnp.int32)
    idx_pack = idx_pack.at[:B * CE, 0].set(ce_pos)
    idx_pack = idx_pack.at[:B * KE, 1].set(kb_idx)
    idx_pack = idx_pack.at[:B * KE, 2].set(kb_col)

    # -- additive attention bias: cross-batch blocking + context padding mask --
    same_b = (jnp.repeat(jnp.arange(B), E)[:, None]
              == jnp.repeat(jnp.arange(B), T)[None, :])
    ctx_valid = (context_mask.reshape(B * T) > 0)[None, :]
    attn_bias = jnp.where(same_b & ctx_valid, 0.0, -1e9).astype(f32)     # [B*E, B*T]

    # -- block-diagonal neighbour matrix ---------------------------------------
    nei = kb_entity_nei.astype(f32)
    nei_bd = (jnp.eye(B, dtype=f32)[:, None, :, None]
              * nei[:, :, None, :]).reshape(B * KE, B * KE)

    # -- fold / pad weights (done once per parameter set in a real model) ------
    def pad_lanes(w):
        return jnp.pad(w.astype(f32), ((0, 0), (0, HP - w.shape[1])))

    w1_p = pad_lanes(params["w1"])                                       # [D+H, HP]
    b1_p = pad_lanes(params["b1"])                                       # [1, HP]
    waw2a = jnp.concatenate([params["wa"], params["w2"][:D]], axis=1).astype(f32)
    w2b = params["w2"][D:].astype(f32)
    b2 = params["b2"].astype(f32)
    wrel = jnp.concatenate([pad_lanes(params["W"][r].T) for r in range(I)]
                           + [pad_lanes(params["w0"])], axis=1)          # [H, (I+1)*HP]

    out_ce_p, out_kb_p = pl.pallas_call(
        entity_encoder_kernel,
        out_shape=(jax.ShapeDtypeStruct((B * CE, HP), f32),
                   jax.ShapeDtypeStruct((B * KE, HP), f32)),
    )(ctx_hidden, ctx_embT, ent_emb, idx_pack, attn_bias, nei_bd,
      w1_p, b1_p, waw2a, w2b, b2, wrel)

    out_ce = out_ce_p[:, :H].reshape(B, CE, H)
    out_kb = out_kb_p[:, :H].reshape(B, KE, H)
    return out_ce, out_kb


# ----------------------------------------------------------------------------
# Pure-JAX reference (mirrors the PyTorch forward) for verification.
# ----------------------------------------------------------------------------
def reference_forward(context_emb, context_outputs, context_mask,
                      context_entity_pos, context_entity_mask,
                      entity, kb_entity, kb_entity_mask, kb_entity_col,
                      kb_entity_nei, params):
    B, T, D = context_emb.shape
    E = entity.shape[1]
    entity_emb = jnp.take(params["emb_table"], entity, axis=0)

    oh_ce = (jax.nn.one_hot(context_entity_pos, T, dtype=jnp.float32)
             * context_entity_mask[..., None].astype(jnp.float32))
    ctx_hidden = jnp.concatenate([context_emb, context_outputs], axis=2)
    ce_hidden = jnp.einsum("bct,btd->bcd", oh_ce, ctx_hidden)
    ce_hidden = jax.nn.relu(ce_hidden @ params["w1"] + params["b1"])

    scores = jnp.einsum("bed,dk,btk->bet", entity_emb, params["wa"], context_emb)
    scores = jnp.where(context_mask[:, None, :] > 0, scores, -1e9)
    p = jax.nn.softmax(scores, axis=-1)
    align = jnp.einsum("bet,btd->bed", p, context_emb)
    ent_hidden = jax.nn.relu(
        jnp.concatenate([entity_emb, align], axis=-1) @ params["w2"] + params["b2"])

    oh_kb = (jax.nn.one_hot(kb_entity, E, dtype=jnp.float32)
             * kb_entity_mask[..., None].astype(jnp.float32))
    kb_init = jnp.einsum("bke,beh->bkh", oh_kb, ent_hidden)
    Wsel = params["W"][kb_entity_col]                                    # [B, KE, H, H]
    kb_state = jnp.einsum("bkij,bkj->bki", Wsel, kb_init)
    nei = kb_entity_nei.astype(jnp.float32)
    kb_right = jnp.einsum("bkl,blh->bkh", nei, kb_state)
    nei_sum = jnp.maximum(nei.sum(axis=2, keepdims=True), 1.0)
    kb_right = kb_right / nei_sum
    kb_left = kb_init @ params["w0"]
    kb_hidden = jax.nn.relu(kb_left + kb_right)
    return ce_hidden, kb_hidden


if __name__ == "__main__":
    # Keep XLA reference matmuls at full f32 so the comparison with the Pallas
    # MXU path is not dominated by bf16-pass precision differences.
    jax.config.update("jax_default_matmul_precision", "float32")

    key = jax.random.PRNGKey(0)
    B, T = 2, 8
    D = 32            # embedding_dim
    H = D             # hidden_size (module requires embedding_dim == hidden_size)
    CE, E, KE = 4, 6, 6
    I = 4             # input_size (number of KB relation columns), self.B == 0 branch
    VOCAB = 20

    ks = jax.random.split(key, 20)

    def xavier(k, shape):
        fan_in, fan_out = shape[-2], shape[-1]
        a = (6.0 / (fan_in + fan_out)) ** 0.5
        return jax.random.uniform(k, shape, jnp.float32, -a, a)

    params = dict(
        emb_table=xavier(ks[0], (VOCAB, D)),
        w1=xavier(ks[1], (2 * H, H)),
        b1=jax.random.uniform(ks[2], (1, H), jnp.float32, -0.05, 0.05),
        w2=xavier(ks[3], (D + H, H)),
        b2=jax.random.uniform(ks[4], (1, H), jnp.float32, -0.05, 0.05),
        wa=xavier(ks[5], (D, D)),
        W=xavier(ks[6], (I, D, H)),
        w0=xavier(ks[7], (D, H)),
    )

    context_emb = jax.random.normal(ks[8], (B, T, D), jnp.float32)
    context_outputs = jax.random.normal(ks[9], (B, T, H), jnp.float32)
    context_lengths = jnp.array([T, T - 2])
    context_mask = (jnp.arange(T)[None, :] < context_lengths[:, None]).astype(jnp.float32)
    context_entity_pos = jax.random.randint(ks[10], (B, CE), 0, T)
    context_entity_mask = (jnp.arange(CE)[None, :]
                           < jnp.array([CE, CE - 1])[:, None]).astype(jnp.float32)
    entity = jax.random.randint(ks[11], (B, E), 0, VOCAB)
    kb_entity = jax.random.randint(ks[12], (B, KE), 0, E)
    kb_entity_mask = (jnp.arange(KE)[None, :]
                      < jnp.array([KE, KE - 2])[:, None]).astype(jnp.float32)
    kb_entity_col = jax.random.randint(ks[13], (B, KE), 0, I)
    kb_entity_nei = jax.random.bernoulli(ks[14], 0.5, (B, KE, KE)).astype(jnp.float32)

    args = (context_emb, context_outputs, context_mask,
            context_entity_pos, context_entity_mask,
            entity, kb_entity, kb_entity_mask, kb_entity_col, kb_entity_nei, params)

    out_ce, out_kb = entity_encoder_forward(*args)
    jax.block_until_ready((out_ce, out_kb))

    ref_ce, ref_kb = reference_forward(*args)
    assert out_ce.shape == (B, CE, H) and out_kb.shape == (B, KE, H)
    # tolerance covers MXU-vs-XLA accumulation order and the approx reciprocal
    assert jnp.allclose(out_ce, ref_ce, atol=2e-2, rtol=2e-2)
    assert jnp.allclose(out_kb, ref_kb, atol=2e-2, rtol=2e-2)
    print("KERNEL_OK")
</pallas_src>

<mosaic_0001>
module attributes {stable_mosaic.version = 11 : i64} {
  func.func @entity_encoder_kernel(%arg0: memref<16x64xf32, #tpu.memory_space<vmem>>, %arg1: memref<32x16xf32, #tpu.memory_space<vmem>>, %arg2: memref<12x32xf32, #tpu.memory_space<vmem>>, %arg3: memref<12x4xi32, #tpu.memory_space<vmem>>, %arg4: memref<12x16xf32, #tpu.memory_space<vmem>>, %arg5: memref<12x12xf32, #tpu.memory_space<vmem>>, %arg6: memref<64x128xf32, #tpu.memory_space<vmem>>, %arg7: memref<1x128xf32, #tpu.memory_space<vmem>>, %arg8: memref<32x64xf32, #tpu.memory_space<vmem>>, %arg9: memref<32x32xf32, #tpu.memory_space<vmem>>, %arg10: memref<1x32xf32, #tpu.memory_space<vmem>>, %arg11: memref<32x640xf32, #tpu.memory_space<vmem>>, %arg12: memref<8x128xf32, #tpu.memory_space<vmem>>, %arg13: memref<12x128xf32, #tpu.memory_space<vmem>>) attributes {dimension_semantics = [], scalar_prefetch = 0 : i64, scratch_operands = 0 : i64, tpu.core_type = #tpu.core_type<tc>} {
    %c0 = arith.constant 0 : index
    %c0_0 = arith.constant 0 : index
    %0 = vector.load %arg0[%c0, %c0_0] : memref<16x64xf32, #tpu.memory_space<vmem>>, vector<16x64xf32>
    %c0_1 = arith.constant 0 : index
    %c0_2 = arith.constant 0 : index
    %1 = vector.load %arg3[%c0_1, %c0_2] : memref<12x4xi32, #tpu.memory_space<vmem>>, vector<8x1xi32>
    %2 = tpu.iota {dimensions = array<i32: 1>} : vector<8x16xi32>
    %3 = vector.broadcast %1 : vector<8x1xi32> to vector<8x16xi32>
    %4 = arith.cmpi eq, %2, %3 : vector<8x16xi32>
    %5 = arith.extui %4 : vector<8x16xi1> to vector<8x16xi32>
    %6 = arith.sitofp %5 : vector<8x16xi32> to vector<8x16xf32>
    %cst = arith.constant dense<0.000000e+00> : vector<8x64xf32>
    %7 = tpu.matmul %6, %0, %cst {dimension_numbers = #tpu.dot_dimension_numbers<[1], [0], [0], [1], [0, 0, 1, 1], [], []>, precision = #tpu.contract_precision<fp32>} : vector<8x16xf32>, vector<16x64xf32>, vector<8x64xf32> -> vector<8x64xf32>
    %c0_3 = arith.constant 0 : index
    %c0_4 = arith.constant 0 : index
    %8 = vector.load %arg6[%c0_3, %c0_4] : memref<64x128xf32, #tpu.memory_space<vmem>>, vector<64x128xf32>
    %cst_5 = arith.constant dense<0.000000e+00> : vector<8x128xf32>
    %9 = tpu.matmul %7, %8, %cst_5 {dimension_numbers = #tpu.dot_dimension_numbers<[1], [0], [0], [1], [0, 0, 1, 1], [], []>, precision = #tpu.contract_precision<fp32>} : vector<8x64xf32>, vector<64x128xf32>, vector<8x128xf32> -> vector<8x128xf32>
    %c0_6 = arith.constant 0 : index
    %c0_7 = arith.constant 0 : index
    %10 = vector.load %arg7[%c0_6, %c0_7] : memref<1x128xf32, #tpu.memory_space<vmem>>, vector<1x128xf32>
    %11 = vector.broadcast %10 : vector<1x128xf32> to vector<8x128xf32>
    %12 = arith.addf %9, %11 : vector<8x128xf32>
    %cst_8 = arith.constant 0.000000e+00 : f32
    %13 = vector.broadcast %cst_8 : f32 to vector<8x128xf32>
    %14 = arith.maximumf %12, %13 : vector<8x128xf32>
    %c0_9 = arith.constant 0 : index
    %c0_10 = arith.constant 0 : index
    %15 = vector.load %arg12[%c0_9, %c0_10] : memref<8x128xf32, #tpu.memory_space<vmem>>, vector<8x128xf32>
    tpu.vector_store %arg12[%c0_9, %c0_10], %14 {strides = array<i32>} : memref<8x128xf32, #tpu.memory_space<vmem>>, vector<8x128xf32>,
    %c0_11 = arith.constant 0 : index
    %c0_12 = arith.constant 0 : index
    %16 = vector.load %arg2[%c0_11, %c0_12] : memref<12x32xf32, #tpu.memory_space<vmem>>, vector<12x32xf32>
    %c0_13 = arith.constant 0 : index
    %c0_14 = arith.constant 0 : index
    %17 = vector.load %arg8[%c0_13, %c0_14] : memref<32x64xf32, #tpu.memory_space<vmem>>, vector<32x64xf32>
    %cst_15 = arith.constant dense<0.000000e+00> : vector<12x64xf32>
    %18 = tpu.matmul %16, %17, %cst_15 {dimension_numbers = #tpu.dot_dimension_numbers<[1], [0], [0], [1], [0, 0, 1, 1], [], []>, precision = #tpu.contract_precision<fp32>} : vector<12x32xf32>, vector<32x64xf32>, vector<12x64xf32> -> vector<12x64xf32>
    %19 = vector.extract_strided_slice %18 {offsets = [0, 0], sizes = [12, 32], strides = [1, 1]} : vector<12x64xf32> to vector<12x32xf32>
    %c0_16 = arith.constant 0 : index
    %c0_17 = arith.constant 0 : index
    %20 = vector.load %arg1[%c0_16, %c0_17] : memref<32x16xf32, #tpu.memory_space<vmem>>, vector<32x16xf32>
    %cst_18 = arith.constant dense<0.000000e+00> : vector<12x16xf32>
    %21 = tpu.matmul %19, %20, %cst_18 {dimension_numbers = #tpu.dot_dimension_numbers<[1], [0], [0], [1], [0, 0, 1, 1], [], []>, precision = #tpu.contract_precision<fp32>} : vector<12x32xf32>, vector<32x16xf32>, vector<12x16xf32> -> vector<12x16xf32>
    %c0_19 = arith.constant 0 : index
    %c0_20 = arith.constant 0 : index
    %22 = vector.load %arg4[%c0_19, %c0_20] : memref<12x16xf32, #tpu.memory_space<vmem>>, vector<12x16xf32>
    %23 = arith.addf %21, %22 : vector<12x16xf32>
    %cst_21 = arith.constant dense<0xFF800000> : vector<12xf32>
    %24 = vector.multi_reduction <maximumf>, %23, %cst_21 [1] : vector<12x16xf32> to vector<12xf32>
    %25 = vector.shape_cast %24 : vector<12xf32> to vector<12x1xf32>
    %26 = vector.broadcast %25 : vector<12x1xf32> to vector<12x16xf32>
    %27 = arith.subf %23, %26 : vector<12x16xf32>
    %28 = math.exp %27 : vector<12x16xf32>
    %cst_22 = arith.constant dense<0.000000e+00> : vector<12xf32>
    %29 = vector.multi_reduction <add>, %28, %cst_22 [1] : vector<12x16xf32> to vector<12xf32>
    %30 = vector.shape_cast %29 : vector<12xf32> to vector<12x1xf32>
    %31 = vector.broadcast %30 : vector<12x1xf32> to vector<12x16xf32>
    %32 = arith.divf %28, %31 : vector<12x16xf32>
    %33 = vector.extract_strided_slice %0 {offsets = [0, 0], sizes = [16, 32], strides = [1, 1]} : vector<16x64xf32> to vector<16x32xf32>
    %cst_23 = arith.constant dense<0.000000e+00> : vector<12x32xf32>
    %34 = tpu.matmul %32, %33, %cst_23 {dimension_numbers = #tpu.dot_dimension_numbers<[1], [0], [0], [1], [0, 0, 1, 1], [], []>, precision = #tpu.contract_precision<fp32>} : vector<12x16xf32>, vector<16x32xf32>, vector<12x32xf32> -> vector<12x32xf32>
    %35 = vector.extract_strided_slice %18 {offsets = [0, 32], sizes = [12, 32], strides = [1, 1]} : vector<12x64xf32> to vector<12x32xf32>
    %c0_24 = arith.constant 0 : index
    %c0_25 = arith.constant 0 : index
    %36 = vector.load %arg9[%c0_24, %c0_25] : memref<32x32xf32, #tpu.memory_space<vmem>>, vector<32x32xf32>
    %cst_26 = arith.constant dense<0.000000e+00> : vector<12x32xf32>
    %37 = tpu.matmul %34, %36, %cst_26 {dimension_numbers = #tpu.dot_dimension_numbers<[1], [0], [0], [1], [0, 0, 1, 1], [], []>, precision = #tpu.contract_precision<fp32>} : vector<12x32xf32>, vector<32x32xf32>, vector<12x32xf32> -> vector<12x32xf32>
    %38 = arith.addf %35, %37 : vector<12x32xf32>
    %c0_27 = arith.constant 0 : index
    %c0_28 = arith.constant 0 : index
    %39 = vector.load %arg10[%c0_27, %c0_28] : memref<1x32xf32, #tpu.memory_space<vmem>>, vector<1x32xf32>
    %40 = vector.broadcast %39 : vector<1x32xf32> to vector<12x32xf32>
    %41 = arith.addf %38, %40 : vector<12x32xf32>
    %cst_29 = arith.constant 0.000000e+00 : f32
    %42 = vector.broadcast %cst_29 : f32 to vector<12x32xf32>
    %43 = arith.maximumf %41, %42 : vector<12x32xf32>
    %c0_30 = arith.constant 0 : index
    %c1 = arith.constant 1 : index
    %44 = vector.load %arg3[%c0_30, %c1] : memref<12x4xi32, #tpu.memory_space<vmem>>, vector<12x1xi32>
    %c0_31 = arith.constant 0 : index
    %c2 = arith.constant 2 : index
    %45 = vector.load %arg3[%c0_31, %c2] : memref<12x4xi32, #tpu.memory_space<vmem>>, vector<12x1xi32>
    %46 = tpu.iota {dimensions = array<i32: 1>} : vector<12x12xi32>
    %47 = vector.broadcast %44 : vector<12x1xi32> to vector<12x12xi32>
    %48 = arith.cmpi eq, %46, %47 : vector<12x12xi32>
    %49 = arith.extui %48 : vector<12x12xi1> to vector<12x12xi32>
    %50 = arith.sitofp %49 : vector<12x12xi32> to vector<12x12xf32>
    %cst_32 = arith.constant dense<0.000000e+00> : vector<12x32xf32>
    %51 = tpu.matmul %50, %43, %cst_32 {dimension_numbers = #tpu.dot_dimension_numbers<[1], [0], [0], [1], [0, 0, 1, 1], [], []>, precision = #tpu.contract_precision<fp32>} : vector<12x12xf32>, vector<12x32xf32>, vector<12x32xf32> -> vector<12x32xf32>
    %c0_33 = arith.constant 0 : index
    %c0_34 = arith.constant 0 : index
    %52 = vector.load %arg11[%c0_33, %c0_34] : memref<32x640xf32, #tpu.memory_space<vmem>>, vector<32x640xf32>
    %cst_35 = arith.constant dense<0.000000e+00> : vector<12x640xf32>
    %53 = tpu.matmul %51, %52, %cst_35 {dimension_numbers = #tpu.dot_dimension_numbers<[1], [0], [0], [1], [0, 0, 1, 1], [], []>, precision = #tpu.contract_precision<fp32>} : vector<12x32xf32>, vector<32x640xf32>, vector<12x640xf32> -> vector<12x640xf32>
    %54 = vector.extract_strided_slice %53 {offsets = [0, 512], sizes = [12, 128], strides = [1, 1]} : vector<12x640xf32> to vector<12x128xf32>
    %c0_i32 = arith.constant 0 : i32
    %55 = vector.broadcast %c0_i32 : i32 to vector<12x1xi32>
    %56 = arith.cmpi eq, %45, %55 : vector<12x1xi32>
    %57 = arith.extui %56 : vector<12x1xi1> to vector<12x1xi32>
    %58 = arith.sitofp %57 : vector<12x1xi32> to vector<12x1xf32>
    %59 = vector.extract_strided_slice %53 {offsets = [0, 0], sizes = [12, 128], strides = [1, 1]} : vector<12x640xf32> to vector<12x128xf32>
    %60 = vector.broadcast %58 : vector<12x1xf32> to vector<12x128xf32>
    %61 = arith.mulf %60, %59 : vector<12x128xf32>
    %c1_i32 = arith.constant 1 : i32
    %62 = vector.broadcast %c1_i32 : i32 to vector<12x1xi32>
    %63 = arith.cmpi eq, %45, %62 : vector<12x1xi32>
    %64 = arith.extui %63 : vector<12x1xi1> to vector<12x1xi32>
    %65 = arith.sitofp %64 : vector<12x1xi32> to vector<12x1xf32>
    %66 = vector.extract_strided_slice %53 {offsets = [0, 128], sizes = [12, 128], strides = [1, 1]} : vector<12x640xf32> to vector<12x128xf32>
    %67 = vector.broadcast %65 : vector<12x1xf32> to vector<12x128xf32>
    %68 = arith.mulf %67, %66 : vector<12x128xf32>
    %69 = arith.addf %61, %68 : vector<12x128xf32>
    %c2_i32 = arith.constant 2 : i32
    %70 = vector.broadcast %c2_i32 : i32 to vector<12x1xi32>
    %71 = arith.cmpi eq, %45, %70 : vector<12x1xi32>
    %72 = arith.extui %71 : vector<12x1xi1> to vector<12x1xi32>
    %73 = arith.sitofp %72 : vector<12x1xi32> to vector<12x1xf32>
    %74 = vector.extract_strided_slice %53 {offsets = [0, 256], sizes = [12, 128], strides = [1, 1]} : vector<12x640xf32> to vector<12x128xf32>
    %75 = vector.broadcast %73 : vector<12x1xf32> to vector<12x128xf32>
    %76 = arith.mulf %75, %74 : vector<12x128xf32>
    %77 = arith.addf %69, %76 : vector<12x128xf32>
    %c3_i32 = arith.constant 3 : i32
    %78 = vector.broadcast %c3_i32 : i32 to vector<12x1xi32>
    %79 = arith.cmpi eq, %45, %78 : vector<12x1xi32>
    %80 = arith.extui %79 : vector<12x1xi1> to vector<12x1xi32>
    %81 = arith.sitofp %80 : vector<12x1xi32> to vector<12x1xf32>
    %82 = vector.extract_strided_slice %53 {offsets = [0, 384], sizes = [12, 128], strides = [1, 1]} : vector<12x640xf32> to vector<12x128xf32>
    %83 = vector.broadcast %81 : vector<12x1xf32> to vector<12x128xf32>
    %84 = arith.mulf %83, %82 : vector<12x128xf32>
    %85 = arith.addf %77, %84 : vector<12x128xf32>
    %c0_36 = arith.constant 0 : index
    %c0_37 = arith.constant 0 : index
    %86 = vector.load %arg5[%c0_36, %c0_37] : memref<12x12xf32, #tpu.memory_space<vmem>>, vector<12x12xf32>
    %cst_38 = arith.constant dense<0.000000e+00> : vector<12xf32>
    %87 = vector.multi_reduction <add>, %86, %cst_38 [1] : vector<12x12xf32> to vector<12xf32>
    %88 = vector.shape_cast %87 : vector<12xf32> to vector<12x1xf32>
    %cst_39 = arith.constant 1.000000e+00 : f32
    %89 = vector.broadcast %cst_39 : f32 to vector<12x1xf32>
    %90 = arith.maximumf %88, %89 : vector<12x1xf32>
    %91 = tpu.reciprocal %90 {approx = true} : vector<12x1xf32> -> vector<12x1xf32>
    %cst_40 = arith.constant dense<0.000000e+00> : vector<12x128xf32>
    %92 = tpu.matmul %86, %85, %cst_40 {dimension_numbers = #tpu.dot_dimension_numbers<[1], [0], [0], [1], [0, 0, 1, 1], [], []>, precision = #tpu.contract_precision<fp32>} : vector<12x12xf32>, vector<12x128xf32>, vector<12x128xf32> -> vector<12x128xf32>
    %93 = vector.broadcast %91 : vector<12x1xf32> to vector<12x128xf32>
    %94 = arith.mulf %92, %93 : vector<12x128xf32>
    %95 = arith.addf %54, %94 : vector<12x128xf32>
    %cst_41 = arith.constant 0.000000e+00 : f32
    %96 = vector.broadcast %cst_41 : f32 to vector<12x128xf32>
    %97 = arith.maximumf %95, %96 : vector<12x128xf32>
    %c0_42 = arith.constant 0 : index
    %c0_43 = arith.constant 0 : index
    %98 = vector.load %arg13[%c0_42, %c0_43] : memref<12x128xf32, #tpu.memory_space<vmem>>, vector<12x128xf32>
    tpu.vector_store %arg13[%c0_42, %c0_43], %97 {strides = array<i32>} : memref<12x128xf32, #tpu.memory_space<vmem>>, vector<12x128xf32>,
    return
  }
}

</mosaic_0001>

<bundles_post_ra>
// kernel: tpu_custom_call.1
= control target key start
LH: loop header
LB: loop body
LE: loop exit
PB: predicated region body
PF: predicated region fallthrough
CT: control target
= control target key end

     0   :  { %19 = vsyncpa [#allocation3], 0  ;;  %s4161_s0 = inlined_call_operand.vmem [shape: f32[16,64], index: 0, kind: input, shape index: {}]   ;;  %s4162_s1 = inlined_call_operand.vmem [shape: f32[32,16], index: 1, kind: input, shape index: {}]   ;;  %s4163_s2 = inlined_call_operand.hbm [shape: f32[12,32], index: 2, kind: input, shape index: {}]   ;;  %s4164_s3 = inlined_call_operand.vmem [shape: s32[12,4], index: 3, kind: input, shape index: {}]   ;;  %s4165_s4 = inlined_call_operand.hbm [shape: f32[12,16], index: 4, kind: input, shape index: {}]   ;;  %s4166_s5 = inlined_call_operand.hbm [shape: f32[12,12], index: 5, kind: input, shape index: {}]   ;;  %s4167_s6 = inlined_call_operand.hbm [shape: f32[64,128], index: 6, kind: input, shape index: {}]   ;;  %s4168_s7 = inlined_call_operand.vmem [shape: f32[1,128], index: 7, kind: input, shape index: {}]   ;;  %s4169_s8 = inlined_call_operand.vmem [shape: f32[32,64], index: 8, kind: input, shape index: {}]   ;;  %s4170_s9 = inlined_call_operand.hbm [shape: f32[32,32], index: 9, kind: input, shape index: {}]   ;;  %s4171_s10 = inlined_call_operand.vmem [shape: f32[1,32], index: 10, kind: input, shape index: {}]   ;;  %s4172_s11 = inlined_call_operand.hbm [shape: f32[32,640], index: 11, kind: input, shape index: {}]   ;;  %s4173_s12 = inlined_call_operand.hbm [shape: f32[8,128], index: 12, kind: output, shape index: {0}]   ;;  %s4174_s13 = inlined_call_operand.hbm [shape: f32[12,128], index: 13, kind: output, shape index: {1}]  }
   0x1   :  { %20 = vsyncpa [#allocation6], 0 }
   0x2   :  { %21 = vsyncpa [#allocation9], 0 }
   0x3   :  { %22 = vsyncpa [#allocation12], 0 }
   0x4   :  { %23 = vsyncpa [#allocation4], 0 }
   0x5   :  { %24 = vsyncpa [#allocation15], 0  ;;  %s48_s27 = sshll.u32 %s4165_s4, 4  ;;  %s3460_s28 = smov [#allocation5]   ;;  %s49_s27 = int_to_ptr.hbm [resolvable:$true] %s48_s27 }
   0x6   :  { %s50_s29 = sshll.u32 %s3460_s28, 4  ;;  %s74_s15 = sshll.u32 %s4167_s6, 4  ;;  %s51_s29 = int_to_ptr.vmem [resolvable:$true] %s50_s29  ;;  %s75_s15 = int_to_ptr.hbm [resolvable:$true] %s74_s15 }
   0x7   :  { %s3461_s16 = smov 128   ;;  %s3462_s17 = smov 8  }
   0x8   :  { %56 = dma.hbm_to_vmem [thread:$0]  %s49_s27, 256, %s51_s29, [#allocation6], %s3461_s16, %s3461_s16, %s3462_s17  }
   0x9   :  { %s3463_s18 = smov [#allocation8]   ;;  %s33_s4 = sshll.u32 %s4163_s2, 4  ;;  %s34_s4 = int_to_ptr.hbm [resolvable:$true] %s33_s4 }
   0xa   :  { %s76_s19 = sshll.u32 %s3463_s18, 4  ;;  %s61_s23 = sshll.u32 %s4166_s5, 4  ;;  %s77_s19 = int_to_ptr.vmem [resolvable:$true] %s76_s19  ;;  %s62_s23 = int_to_ptr.hbm [resolvable:$true] %s61_s23 }
   0xb   :  { %82 = dma.hbm_to_vmem [thread:$0]  %s75_s15, 1024, %s77_s19, [#allocation9], %s3461_s16, %s3461_s16, %s3462_s17  }
   0xc   :  { %s3464_s24 = smov [#allocation2]   ;;  %s3465_s26 = smov [#allocation7]  }
   0xd   :  { %s35_s25 = sshll.u32 %s3464_s24, 4  ;;  %s63_s2 = sshll.u32 %s3465_s26, 4  ;;  %s36_s25 = int_to_ptr.vmem [resolvable:$true] %s35_s25  ;;  %s64_s2 = int_to_ptr.vmem [resolvable:$true] %s63_s2 }
   0xe   :  { %41 = dma.hbm_to_vmem [thread:$0]  %s34_s4, 256, %s36_s25, [#allocation3], %s3461_s16, %s3461_s16, %s3462_s17  }
   0xf   :  { %s91_s29 = sshll.u32 %s4170_s9, 4  ;;  %s106_s14 = sshll.u32 %s4172_s11, 4  ;;  %s92_s29 = int_to_ptr.hbm [resolvable:$true] %s91_s29  ;;  %s107_s14 = int_to_ptr.hbm [resolvable:$true] %s106_s14 }
  0x10   :  { %69 = dma.hbm_to_vmem [thread:$0]  %s62_s23, 256, %s64_s2, [#allocation6], %s3461_s16, %s3461_s16, %s3462_s17  }
  0x11   :  { %s3466_s15 = smov [#allocation10]   ;;  %s3467_s19 = smov [#allocation11]  }
  0x12   :  { %s93_s18 = sshll.u32 %s3466_s15, 4  ;;  %s108_s9 = sshll.u32 %s3467_s19, 4  ;;  %s94_s18 = int_to_ptr.vmem [resolvable:$true] %s93_s18  ;;  %s109_s9 = int_to_ptr.vmem [resolvable:$true] %s108_s9 }
  0x13   :  { %99 = dma.hbm_to_vmem [thread:$0]  %s92_s29, 512, %s94_s18, [#allocation9], %s3461_s16, %s3461_s16, %s3462_s17  }
  0x14   :  { %s3468_s20 = smov 640   ;;  %s3469_s21 = smov 40  }
  0x15   :  { %114 = dma.hbm_to_vmem [thread:$0]  %s107_s14, 2560, %s109_s9, [#allocation12], %s3468_s20, %s3468_s20, %s3469_s21  }
  0x16   :  { %3448 = dma.done.wait [#allocation3], 256  }
  0x17   :  { %3449 = vsyncadd [#allocation3], 4294967040 }
  0x18   :  { %3450 = dma.done.wait [#allocation6], 512  }
  0x19   :  { %3451 = vsyncadd [#allocation6], 4294966784 }
  0x1a   :  { %3452 = dma.done.wait [#allocation9], 1536  }
  0x1b   :  { %3453 = vsyncadd [#allocation9], 4294965760 }
  0x1c   :  { %3454 = dma.done.wait [#allocation12], 2560  }
  0x1d   :  { %3455 = vsyncadd [#allocation12], 4294964736  ;;  %v3470_v0 = vmov 0   ;;  %v141_v1 = vld [vmem:[%s4164_s3] sm:$0xff]  ;;  %v140_v2 = vld [vmem:[%s4161_s0 + $0x8] sm:$0xff]  ;;  %v142_v14 = vlaneseq  ;;  %vm150_vm0 = vcmask 130048  }
  0x1e   :  { %3217 = vset.pattern.permute.xlu0 %v3470_v0  ;;  %v3587_v3 = vand.u32 4294901760, %v140_v2  ;;  %v139_v4 = vld [vmem:[%s4161_s0] sm:$0xff]  ;;  %v3471_v17 = vmov 0.0   ;;  %v320_v24 = vld [vmem:[#allocation8 + $0x38] sm:$0xff]  ;;  %v318_v29 = vld [vmem:[#allocation8 + $0x28] sm:$0xff]  ;;  %vm574_vm2 = vcmask 261120  }
  0x1f   :  { %145 = vperm.xlu0 %3217, %v141_v1   ;;  %v3595_v6 = vand.u32 4294901760, %v139_v4  ;;  %v3626_v15 = vand.u32 127, %v142_v14  ;;  %v3634_v25 = vand.u32 4294901760, %v320_v24  ;;  %v319_v26 = vld [vmem:[#allocation8 + $0x30] sm:$0xff]  ;;  %v3647_v32 = vand.u32 4294901760, %v318_v29  ;;  %v317_v33 = vld [vmem:[#allocation8 + $0x20] sm:$0xff] }
  0x20   :  { %v3593_v5 = vsub.f32 %v140_v2, %v3587_v3  ;;  %253 = vmatpush.msra.mxu3 %v3587_v3  ;;  %169 = vmatpush.msra.mxu0 %v3587_v3  ;;  %v3639_v28 = vand.u32 4294901760, %v319_v26  ;;  %v3657_v37 = vand.u32 4294901760, %v317_v33  ;;  %v316_v38 = vld [vmem:[#allocation8 + $0x18] sm:$0xff]  ;;  %v315_v44 = vld [vmem:[#allocation8 + $0x10] sm:$0xff]  ;;  %v314_v50 = vld [vmem:[#allocation8 + $0x8] sm:$0xff]  ;;  %vm325_vm3 = vcmask 523264  }
  0x21   :  { %v3603_v8 = vsub.f32 %v139_v4, %v3595_v6  ;;  %v3637_v27 = vsub.f32 %v320_v24, %v3634_v25  ;;  %v3655_v36 = vsub.f32 %v318_v29, %v3647_v32  ;;  %v3667_v43 = vand.u32 4294901760, %v316_v38  ;;  %v313_v56 = vld [vmem:[#allocation8] sm:$0xff]  ;;  %s3472_s4 = smov 32   ;;  %s3476_s24 = smov [#allocation13]  }
  0x22   :  { %v3600_v7 = vand.u32 4294901760, %v3593_v5  ;;  %228 = vmatpush.msra.mxu2 %v3593_v5  ;;  %255 = vmatpush.msra.mxu3 %v3595_v6  ;;  %v3645_v31 = vsub.f32 %v319_v26, %v3639_v28  ;;  %v389_v42 = vsub.f32 %v317_v33, %v3657_v37  ;;  %v347_v48 = vand.u32 4294901760, %v315_v44  ;;  %s3146_s0 = sshll.u32 %s3476_s24, 4  ;;  %s3148_s2 = sshll.u32 %s4173_s12, 4  ;;  %s3147_s0 = int_to_ptr.vmem [resolvable:$true] %s3146_s0  ;;  %s3149_s2 = int_to_ptr.hbm [resolvable:$true] %s3148_s2 }
  0x23   :  { %171 = vmatpush.msra.mxu0 %v3595_v6  ;;  %v3611_v10 = vand.u32 4294901760, %v3603_v8  ;;  %v372_v30 = vand.u32 4294901760, %v3637_v27  ;;  %v384_v41 = vand.u32 4294901760, %v3655_v36  ;;  %v395_v49 = vsub.f32 %v316_v38, %v3667_v43  ;;  %s3477_s12 = smov [#allocation14]   ;;  %s3158_s5 = sshll.u32 %s4174_s13, 4  ;;  %s3159_s5 = int_to_ptr.hbm [resolvable:$true] %s3158_s5 }
  0x24   :  { %v198_v9 = vsub.f32 %v3593_v5, %v3600_v7  ;;  %231 = vmatpush.msra.mxu2 %v3603_v8  ;;  %v378_v35 = vand.u32 4294901760, %v3645_v31  ;;  %v390_v47 = vand.u32 4294901760, %v389_v42  ;;  %v401_v53 = vsub.f32 %v315_v44, %v347_v48  ;;  %v568_v44 = vld [vmem:[#allocation2] sm:$0xff]  ;;  %s3156_s27 = sshll.u32 %s3477_s12, 4  ;;  %s3157_s27 = int_to_ptr.vmem [resolvable:$true] %s3156_s27 }
  0x25   :  { %280 = vmatpush.msrb.mxu0 %v3600_v7  ;;  %v204_v12 = vsub.f32 %v3603_v8, %v3611_v10  ;;  %v373_v34 = vsub.f32 %v3637_v27, %v372_v30  ;;  %v385_v46 = vsub.f32 %v3655_v36, %v384_v41  ;;  %v349_v54 = vand.u32 4294901760, %v314_v50 }
  0x26   :  { %v3615_v11 = vand.u32 4294901760, %v198_v9  ;;  %338 = vmatpush.msrb.mxu2 %v3634_v25  ;;  %v379_v40 = vsub.f32 %v3645_v31, %v378_v35  ;;  %v391_v52 = vsub.f32 %v389_v42, %v390_v47  ;;  %v396_v55 = vand.u32 4294901760, %v395_v49 }
  0x27   :  { %284 = vmatpush.msrb.mxu0 %v3611_v10  ;;  %v3621_v13 = vand.u32 4294901760, %v204_v12  ;;  %v374_v39 = vand.u32 4294901760, %v373_v34  ;;  %v386_v51 = vand.u32 4294901760, %v385_v46  ;;  %v402_v58 = vand.u32 4294901760, %v401_v53 }
  0x28   :  { %200 = vmatpush.msra.mxu1 %v3615_v11  ;;  %340 = vmatpush.msrb.mxu2 %v3639_v28  ;;  %v380_v45 = vand.u32 4294901760, %v379_v40  ;;  %v392_v57 = vand.u32 4294901760, %v391_v52  ;;  %v407_v59 = vsub.f32 %v314_v50, %v349_v54  ;;  %v351_v60 = vand.u32 4294901760, %v313_v56 }
  0x29   :  { %375 = vmatpush.msrb.mxu3 %v374_v39  ;;  %v397_v61 = vsub.f32 %v395_v49, %v396_v55  ;;  %v403_v62 = vsub.f32 %v401_v53, %v402_v58  ;;  %vm1028_vm4 = vcmask 125952   ;;  %vm1537_vm14 = vcmask 97280  }
  0x2a   :  { %206 = vmatpush.msra.mxu1 %v3621_v13  ;;  %342 = vmatpush.msrb.mxu2 %v3647_v32  ;;  %v408_v63 = vand.u32 4294901760, %v407_v59  ;;  %v413_v0 = vsub.f32 %v313_v56, %v351_v60 }
  0x2b   :  { %381 = vmatpush.msrb.mxu3 %v380_v45  ;;  %v398_v1 = vand.u32 4294901760, %v397_v61  ;;  %v404_v2 = vand.u32 4294901760, %v403_v62 }
  0x2c   :  { %305 = vmatpush.msrb.mxu1 %v3587_v3  ;;  %344 = vmatpush.msrb.mxu2 %v3657_v37  ;;  %v409_v4 = vsub.f32 %v407_v59, %v408_v63  ;;  %v414_v9 = vand.u32 4294901760, %v413_v0 }
  0x2d   :  { %387 = vmatpush.msrb.mxu3 %v386_v51 }
  0x2e   :  { %307 = vmatpush.msrb.mxu1 %v3595_v6  ;;  %346 = vmatpush.msrb.mxu2 %v3667_v43  ;;  %v410_v12 = vand.u32 4294901760, %v409_v4  ;;  %v415_v14 = vsub.f32 %v413_v0, %v414_v9 }
  0x2f   :  { %393 = vmatpush.msrb.mxu3 %v392_v57 }
  0x30   :  { %348 = vmatpush.msrb.mxu2 %v347_v48 }
  0x31   :  { %399 = vmatpush.msrb.mxu3 %v398_v1 }
  0x32   :  { %350 = vmatpush.msrb.mxu2 %v349_v54 }
  0x33   :  { %405 = vmatpush.msrb.mxu3 %v404_v2 }
  0x34   :  { %352 = vmatpush.msrb.mxu2 %v351_v60 }
  0x35   :  { %411 = vmatpush.msrb.mxu3 %v410_v12 }
  0x91   :  { %v146_v16 = vpop.permute.xlu0 %145 }
  0x92   :  { %vm147_vm1 = vcmp.eq.s32.totalorder %v3626_v15, %v146_v16  ;;  %v416_v16 = vand.u32 4294901760, %v415_v14 }
  0x93   :  { %v3179_v18 = vsel %vm147_vm1, 1.0, %v3471_v17 }
  0x94   :  { %3180 = vmatmul.msk.f32.vlgmr.msra.gmra.mxu1 %vm150_vm0, %v3179_v18  ;;  %v152_v19 = vsel %vm150_vm0, %v3179_v18, 0  ;;  %417 = vmatpush.msrb.mxu3 %v416_v16 }
  0x95   :  { %v173_v20 = vsub.f32 %v152_v19, %v152_v19  ;;  %470 = vmatpush.msra.mxu1 %v3634_v25 }
  0x97   :  { %234 = vmatmul.f32.vlgmr.msra.gmra.mxu2 %v173_v20  ;;  %v174_v21 = vand.u32 4294901760, %v173_v20  ;;  %472 = vmatpush.msra.mxu1 %v3639_v28 }
  0x98   :  { %503 = vmatpush.msra.mxu2 %v372_v30 }
  0x99   :  { %259 = vmatmul.f32.vlgmr.msra.gmra.mxu3 %v174_v21  ;;  %v175_v22 = vsub.f32 %v173_v20, %v174_v21  ;;  %474 = vmatpush.msra.mxu1 %v3647_v32  ;;  %v572_v20 = vld [vmem:[%s4169_s8 + $0x10] sm:$0xff] }
  0x9a   :  { %507 = vmatpush.msra.mxu2 %v378_v35  ;;  %546 = vmatpush.msra.mxu3 %v3634_v25 }
  0x9b   :  { %v176_v23 = vand.u32 4294901760, %v175_v22  ;;  %476 = vmatpush.msra.mxu1 %v3657_v37  ;;  %v3691_v22 = vand.u32 4294901760, %v572_v20 }
  0x9c   :  { %3182 = vmatmul.msk.f32.vlgmr.msrb.gmra.mxu1 %vm150_vm0, %v3179_v18  ;;  %511 = vmatpush.msra.mxu2 %v384_v41 }
  0x9d   :  { %177 = vmatmul.f32.vlgmr.msra.gmra.mxu0 %v176_v23  ;;  %478 = vmatpush.msra.mxu1 %v3667_v43  ;;  %v571_v23 = vld [vmem:[%s4169_s8 + $0x8] sm:$0xff]  ;;  %v3699_v25 = vsub.f32 %v572_v20, %v3691_v22 }
  0x9e   :  { %433 = vmatpush.msra.mxu0 %v3637_v27  ;;  %515 = vmatpush.msra.mxu2 %v390_v47  ;;  %v3701_v26 = vand.u32 4294901760, %v571_v23  ;;  %v570_v27 = vld [vmem:[%s4169_s8] sm:$0xff] }
  0x9f   :  { %480 = vmatpush.msra.mxu1 %v347_v48  ;;  %548 = vmatpush.msra.mxu3 %v3639_v28  ;;  %v638_v29 = vand.u32 4294901760, %v3699_v25 }
  0xa0   :  { %436 = vmatpush.msra.mxu0 %v3645_v31  ;;  %519 = vmatpush.msra.mxu2 %v396_v55  ;;  %v3710_v30 = vsub.f32 %v571_v23, %v3701_v26  ;;  %v3712_v31 = vand.u32 4294901760, %v570_v27 }
  0xa1   :  { %482 = vmatpush.msra.mxu1 %v349_v54  ;;  %550 = vmatpush.msra.mxu3 %v3647_v32  ;;  %v639_v33 = vsub.f32 %v3699_v25, %v638_v29 }
  0xa2   :  { %439 = vmatpush.msra.mxu0 %v3655_v36  ;;  %523 = vmatpush.msra.mxu2 %v402_v58  ;;  %v644_v34 = vand.u32 4294901760, %v3710_v30  ;;  %v3718_v35 = vsub.f32 %v570_v27, %v3712_v31 }
  0xa3   :  { %484 = vmatpush.msra.mxu1 %v351_v60  ;;  %552 = vmatpush.msra.mxu3 %v3657_v37  ;;  %v640_v36 = vand.u32 4294901760, %v639_v33 }
  0xa4   :  { %442 = vmatpush.msra.mxu0 %v389_v42  ;;  %527 = vmatpush.msra.mxu2 %v408_v63  ;;  %v645_v37 = vsub.f32 %v3710_v30, %v644_v34  ;;  %v650_v38 = vand.u32 4294901760, %v3718_v35 }
  0xa5   :  { %3181 = vmatmul.msk.f32.vlgmr.msrb.gmra.mxu0 %vm150_vm0, %v3179_v18  ;;  %v573_v18 = vld [vmem:[%s4169_s8 + $0x18] sm:$0xff]  ;;  %554 = vmatpush.msra.mxu3 %v3667_v43 }
  0xa6   :  { %445 = vmatpush.msra.mxu0 %v395_v49  ;;  %531 = vmatpush.msra.mxu2 %v414_v9  ;;  %v3681_v19 = vand.u32 4294901760, %v573_v18  ;;  %v646_v39 = vand.u32 4294901760, %v645_v37  ;;  %v651_v40 = vsub.f32 %v3718_v35, %v650_v38 }
  0xa7   :  { %556 = vmatpush.msra.mxu3 %v347_v48  ;;  %v576_v48 = vsel %vm574_vm2, %v568_v44, 0 }
  0xa8   :  { %448 = vmatpush.msra.mxu0 %v401_v53  ;;  %v3689_v21 = vsub.f32 %v573_v18, %v3681_v19  ;;  %v652_v41 = vand.u32 4294901760, %v651_v40  ;;  %v601_v50 = vand.u32 4294901760, %v576_v48  ;;  %v569_v53 = vld [vmem:[#allocation2 + $0x8] sm:$0xf] }
  0xa9   :  { %558 = vmatpush.msra.mxu3 %v349_v54  ;;  %v579_v58 = vsel %vm574_vm2, %v569_v53, 0 }
  0xaa   :  { %451 = vmatpush.msra.mxu0 %v407_v59  ;;  %v632_v24 = vand.u32 4294901760, %v3689_v21  ;;  %v602_v56 = vsub.f32 %v576_v48, %v601_v50  ;;  %v609_v62 = vand.u32 4294901760, %v579_v58 }
  0xab   :  { %560 = vmatpush.msra.mxu3 %v351_v60 }
  0xac   :  { %454 = vmatpush.msra.mxu0 %v413_v0  ;;  %v633_v28 = vsub.f32 %v3689_v21, %v632_v24  ;;  %v603_v61 = vand.u32 4294901760, %v602_v56  ;;  %v610_v2 = vsub.f32 %v579_v58, %v609_v62 }
  0xae   :  { %594 = vmatpush.msrb.mxu0 %v3681_v19  ;;  %v634_v32 = vand.u32 4294901760, %v633_v28  ;;  %v604_v1 = vsub.f32 %v602_v56, %v603_v61  ;;  %v611_v14 = vand.u32 4294901760, %v610_v2  ;;  %v797_v28 = vld [vmem:[%s4162_s1] sm:$0xff] }
  0xb0   :  { %596 = vmatpush.msrb.mxu0 %v3691_v22  ;;  %635 = vmatpush.msrb.mxu1 %v634_v32  ;;  %v605_v12 = vand.u32 4294901760, %v604_v1  ;;  %v612_v16 = vsub.f32 %v610_v2, %v611_v14  ;;  %v827_v32 = vand.u32 4294901760, %v797_v28 }
  0xb2   :  { %598 = vmatpush.msrb.mxu0 %v3701_v26  ;;  %641 = vmatpush.msrb.mxu1 %v640_v36  ;;  %v613_v18 = vand.u32 4294901760, %v612_v16  ;;  %v877_v36 = vsub.f32 %v797_v28, %v827_v32 }
  0xb4   :  { %600 = vmatpush.msrb.mxu0 %v3712_v31  ;;  %647 = vmatpush.msrb.mxu1 %v646_v39  ;;  %v878_v40 = vand.u32 4294901760, %v877_v36 }
  0xb6   :  { %653 = vmatpush.msrb.mxu1 %v652_v41 }
 0x111   :  { %v209_v42 = vpop.f32.mrf.mxu1 }
 0x119   :  { %v310_v55 = vpop.f32.mrf.mxu1 }
 0x11a   :  { %v178_v43 = vpop.f32.mrf.mxu0  ;;  %v235_v46 = vpop.f32.mrf.mxu2 }
 0x11b   :  { %v210_v45 = vadd.f32 %v209_v42, %v178_v43  ;;  %v879_v42 = vsub.f32 %v877_v36, %v878_v40 }
 0x11c   :  { %v260_v49 = vpop.f32.mrf.mxu3 }
 0x11d   :  { %v236_v47 = vadd.f32 %v235_v46, %v210_v45  ;;  %v880_v44 = vand.u32 4294901760, %v879_v42 }
 0x11f   :  { %v261_v51 = vadd.f32 %v260_v49, %v236_v47 }
 0x122   :  { %v287_v52 = vpop.f32.mrf.mxu0 }
 0x123   :  { %v288_v54 = vadd.f32 %v287_v52, %v261_v51 }
 0x125   :  { %v311_v57 = vadd.f32 %v310_v55, %v288_v54 }
 0x127   :  { %v327_v59 = vsel %vm325_vm3, %v311_v57, 0 }
 0x128   :  { %v353_v60 = vand.u32 4294901760, %v327_v59 }
 0x12a   :  { %v354_v63 = vsub.f32 %v327_v59, %v353_v60  ;;  %419 = vmatmul.f32.vlgmr.msrb.gmra.mxu3 %v353_v60 }
 0x12b   :  { %711 = vmatpush.msrb.mxu3 %v3681_v19 }
 0x12c   :  { %457 = vmatmul.f32.vlgmr.msra.gmra.mxu0 %v354_v63  ;;  %v355_v0 = vand.u32 4294901760, %v354_v63 }
 0x12d   :  { %713 = vmatpush.msrb.mxu3 %v3691_v22  ;;  %746 = vmatpush.msra.mxu0 %v632_v24  ;;  %v798_v24 = vld [vmem:[%s4162_s1 + $0x8] sm:$0xff] }
 0x12e   :  { %488 = vmatmul.f32.vlgmr.msra.gmra.mxu1 %v355_v0  ;;  %v356_v4 = vsub.f32 %v354_v63, %v355_v0  ;;  %v825_v27 = vand.u32 4294901760, %v798_v24 }
 0x12f   :  { %715 = vmatpush.msrb.mxu3 %v3701_v26  ;;  %750 = vmatpush.msra.mxu0 %v638_v29 }
 0x130   :  { %v357_v9 = vand.u32 4294901760, %v356_v4  ;;  %781 = vmatpush.msra.mxu1 %v3681_v19  ;;  %v800_v19 = vld [vmem:[%s4162_s1 + $0x18] sm:$0xff] }
 0x131   :  { %717 = vmatpush.msrb.mxu3 %v3712_v31  ;;  %754 = vmatpush.msra.mxu0 %v644_v34  ;;  %v821_v20 = vand.u32 4294901760, %v800_v19 }
 0x132   :  { %358 = vmatmul.f32.vlgmr.msrb.gmra.mxu2 %v357_v9  ;;  %562 = vmatmul.f32.vlgmr.msra.gmra.mxu3 %v353_v60 }
 0x133   :  { %677 = vmatpush.msrb.mxu2 %v3689_v21  ;;  %783 = vmatpush.msra.mxu1 %v3691_v22  ;;  %v799_v21 = vld [vmem:[%s4162_s1 + $0x10] sm:$0xff]  ;;  %v859_v22 = vsub.f32 %v800_v19, %v821_v20 }
 0x134   :  { %606 = vmatmul.f32.vlgmr.msrb.gmra.mxu0 %v605_v12  ;;  %v823_v23 = vand.u32 4294901760, %v799_v21 }
 0x135   :  { %680 = vmatpush.msrb.mxu2 %v3699_v25  ;;  %758 = vmatpush.msra.mxu0 %v650_v38  ;;  %v860_v25 = vand.u32 4294901760, %v859_v22 }
 0x136   :  { %655 = vmatmul.f32.vlgmr.msrb.gmra.mxu1 %v601_v50 }
 0x137   :  { %683 = vmatpush.msrb.mxu2 %v3710_v30  ;;  %785 = vmatpush.msra.mxu1 %v3701_v26  ;;  %v865_v26 = vsub.f32 %v799_v21, %v823_v23  ;;  %v861_v29 = vsub.f32 %v859_v22, %v860_v25 }
 0x138   :  { %905 = vmatpush.msrb.mxu0 %v859_v22 }
 0x139   :  { %686 = vmatpush.msrb.mxu2 %v3718_v35  ;;  %787 = vmatpush.msra.mxu1 %v3712_v31  ;;  %v866_v30 = vand.u32 4294901760, %v865_v26  ;;  %v871_v31 = vsub.f32 %v798_v24, %v825_v27  ;;  %v862_v33 = vand.u32 4294901760, %v861_v29 }
 0x13a   :  { %533 = vmatmul.f32.vlgmr.msra.gmra.mxu2 %v353_v60  ;;  %721 = vmatmul.f32.vlgmr.msrb.gmra.mxu3 %v603_v61 }
 0x13b   :  { %939 = vmatpush.msrb.mxu1 %v821_v20  ;;  %822 = vmatpush.msra.mxu2 %v821_v20  ;;  %v867_v34 = vsub.f32 %v865_v26, %v866_v30  ;;  %v872_v35 = vand.u32 4294901760, %v871_v31 }
 0x13c   :  { %614 = vmatmul.f32.gmra.mxu0 %v613_v18  ;;  %863 = vmatpush.msra.mxu3 %v862_v33 }
 0x13d   :  { %941 = vmatpush.msrb.mxu1 %v823_v23  ;;  %824 = vmatpush.msra.mxu2 %v823_v23  ;;  %v868_v38 = vand.u32 4294901760, %v867_v34  ;;  %v873_v39 = vsub.f32 %v871_v31, %v872_v35 }
 0x13e   :  { %659 = vmatmul.f32.gmra.mxu1 %v609_v62  ;;  %908 = vmatpush.msrb.mxu0 %v865_v26 }
 0x13f   :  { %943 = vmatpush.msrb.mxu1 %v825_v27  ;;  %826 = vmatpush.msra.mxu2 %v825_v27  ;;  %v874_v41 = vand.u32 4294901760, %v873_v39 }
 0x140   :  { %911 = vmatpush.msrb.mxu0 %v871_v31  ;;  %869 = vmatpush.msra.mxu3 %v868_v38 }
 0x141   :  { %945 = vmatpush.msrb.mxu1 %v827_v32  ;;  %828 = vmatpush.msra.mxu2 %v827_v32 }
 0x142   :  { %689 = vmatmul.f32.vlgmr.msrb.gmra.mxu2 %v602_v56  ;;  %727 = vmatmul.f32.gmra.mxu3 %v611_v14 }
 0x143   :  { %914 = vmatpush.msrb.mxu0 %v877_v36  ;;  %974 = vmatpush.msrb.mxu2 %v860_v25 }
 0x144   :  { %760 = vmatmul.f32.vlgmr.msra.gmra.mxu0 %v601_v50  ;;  %875 = vmatpush.msra.mxu3 %v874_v41 }
 0x145   :  { %1095 = vmatpush.msra.mxu0 %v3587_v3  ;;  %978 = vmatpush.msrb.mxu2 %v866_v30 }
 0x146   :  { %789 = vmatmul.f32.vlgmr.msra.gmra.mxu1 %v601_v50  ;;  %881 = vmatpush.msra.mxu3 %v880_v44 }
 0x147   :  { %1134 = vmatpush.msra.mxu1 %v3615_v11  ;;  %1097 = vmatpush.msra.mxu0 %v3595_v6 }
 0x148   :  { %982 = vmatpush.msrb.mxu2 %v872_v35  ;;  %1009 = vmatpush.msrb.mxu3 %v821_v20 }
 0x149   :  { %1140 = vmatpush.msra.mxu1 %v3621_v13  ;;  %v3242_v13 = vld [vmem:[%s4168_s7] ss:$0 sm:$0xff] }
 0x14a   :  { %694 = vmatmul.f32.gmra.mxu2 %v610_v2  ;;  %1011 = vmatpush.msrb.mxu3 %v823_v23 }
 0x14b   :  { %986 = vmatpush.msrb.mxu2 %v878_v40 }
 0x14c   :  { %764 = vmatmul.f32.gmra.mxu0 %v609_v62  ;;  %1013 = vmatpush.msrb.mxu3 %v825_v27 }
 0x14e   :  { %793 = vmatmul.f32.gmra.mxu1 %v609_v62  ;;  %1015 = vmatpush.msrb.mxu3 %v827_v32 }
 0x1a9   :  { %v458_v37 = vpop.f32.mrf.mxu0 }
 0x1ab   :  { %v489_v43 = vpop.f32.mrf.mxu1 }
 0x1ad   :  { %v420_v11 = vpop.f32.mrf.mxu3 }
 0x1b1   :  { %v607_v45 = vpop.f32.mrf.mxu0 }
 0x1b3   :  { %v656_v47 = vpop.f32.mrf.mxu1 }
 0x1b4   :  { %v657_v60 = vadd.f32 %v656_v47, %v607_v45 }
 0x1b5   :  { %v359_v46 = vpop.f32.mrf.mxu2  ;;  %v563_v51 = vpop.f32.mrf.mxu3 }
 0x1b6   :  { %v360_v48 = vadd.f32 %v3242_v13, %v359_v46 }
 0x1b8   :  { %v421_v49 = vadd.f32 %v420_v11, %v360_v48 }
 0x1b9   :  { %v615_v52 = vpop.f32.mrf.mxu0 }
 0x1ba   :  { %v459_v50 = vadd.f32 %v458_v37, %v421_v49 }
 0x1bb   :  { %v660_v56 = vpop.f32.mrf.mxu1 }
 0x1bc   :  { %v490_v53 = vadd.f32 %v489_v43, %v459_v50  ;;  %v661_v4 = vadd.f32 %v660_v56, %v615_v52 }
 0x1bd   :  { %v534_v54 = vpop.f32.mrf.mxu2  ;;  %v722_v59 = vpop.f32.mrf.mxu3 }
 0x1be   :  { %v535_v55 = vadd.f32 %v534_v54, %v490_v53 }
 0x1c0   :  { %v564_v57 = vadd.f32 %v563_v51, %v535_v55 }
 0x1c1   :  { %v761_v62 = vpop.f32.mrf.mxu0 }
 0x1c2   :  { %v566_v58 = vmax.f32 %v564_v57, 0.0 }
 0x1c3   :  { %v790_v0 = vpop.f32.mrf.mxu1 }
 0x1c4   :  { %567 = vst [vmem:[#allocation13] sm:$0xff] %v566_v58 }
 0x1c5   :  { %v690_v61 = vpop.f32.mrf.mxu2  ;;  %v728_v14 = vpop.f32.mrf.mxu3  ;;  %3151 = dma.vmem_to_hbm [thread:$0]  %s3147_s0, 128, %s3149_s2, [#allocation4]  }
 0x1c6   :  { %v691_v63 = vadd.f32 %v690_v61, %v657_v60 }
 0x1c8   :  { %v723_v1 = vadd.f32 %v722_v59, %v691_v63 }
 0x1c9   :  { %v765_v20 = vpop.f32.mrf.mxu0 }
 0x1ca   :  { %v762_v2 = vadd.f32 %v761_v62, %v723_v1 }
 0x1cb   :  { %v794_v23 = vpop.f32.mrf.mxu1 }
 0x1cc   :  { %v3756_v9 = vadd.f32 %v790_v0, %v762_v2 }
 0x1cd   :  { %v695_v12 = vpop.f32.mrf.mxu2 }
 0x1ce   :  { %v804_v16 = vsel %vm574_vm2, %v3756_v9, 0  ;;  %v696_v18 = vadd.f32 %v695_v12, %v661_v4 }
 0x1cf   :  { %v829_v19 = vand.u32 4294901760, %v804_v16 }
 0x1d0   :  { %v729_v21 = vadd.f32 %v728_v14, %v696_v18 }
 0x1d1   :  { %v830_v22 = vsub.f32 %v804_v16, %v829_v19  ;;  %883 = vmatmul.f32.vlgmr.msra.gmra.mxu3 %v829_v19 }
 0x1d2   :  { %v766_v24 = vadd.f32 %v765_v20, %v729_v21  ;;  %1196 = vmatpush.msra.mxu3 %v3587_v3 }
 0x1d3   :  { %917 = vmatmul.f32.vlgmr.msrb.gmra.mxu0 %v830_v22  ;;  %v831_v25 = vand.u32 4294901760, %v830_v22 }
 0x1d4   :  { %v3761_v26 = vadd.f32 %v794_v23, %v766_v24  ;;  %1198 = vmatpush.msra.mxu3 %v3595_v6  ;;  %1229 = vmatpush.msrb.mxu0 %v3600_v7 }
 0x1d5   :  { %949 = vmatmul.f32.vlgmr.msrb.gmra.mxu1 %v831_v25  ;;  %v832_v27 = vsub.f32 %v830_v22, %v831_v25 }
 0x1d6   :  { %v807_v28 = vsel %vm574_vm2, %v3761_v26, 0  ;;  %1258 = vmatpush.msrb.mxu1 %v3587_v3  ;;  %1233 = vmatpush.msrb.mxu0 %v3611_v10  ;;  %v801_v10 = vld [vmem:[#allocation5] sm:$0xff] }
 0x1d7   :  { %v837_v29 = vand.u32 4294901760, %v807_v28  ;;  %v833_v30 = vand.u32 4294901760, %v832_v27 }
 0x1d8   :  { %1260 = vmatpush.msrb.mxu1 %v3595_v6 }
 0x1d9   :  { %834 = vmatmul.f32.vlgmr.msra.gmra.mxu2 %v833_v30  ;;  %887 = vmatmul.f32.gmra.mxu3 %v837_v29  ;;  %v838_v31 = vsub.f32 %v807_v28, %v837_v29 }
 0x1da   :  { %1166 = vmatpush.msra.mxu2 %v3593_v5  ;;  %v802_v5 = vld [vmem:[#allocation5 + $0x8] sm:$0xf] }
 0x1db   :  { %922 = vmatmul.f32.gmra.mxu0 %v838_v31  ;;  %v839_v7 = vand.u32 4294901760, %v838_v31 }
 0x1dc   :  { %1169 = vmatpush.msra.mxu2 %v3603_v8 }
 0x1dd   :  { %955 = vmatmul.f32.gmra.mxu1 %v839_v7  ;;  %v840_v32 = vsub.f32 %v838_v31, %v839_v7 }
 0x1df   :  { %v841_v33 = vand.u32 4294901760, %v840_v32 }
 0x1e1   :  { %842 = vmatmul.f32.gmra.mxu2 %v841_v33  ;;  %1017 = vmatmul.f32.vlgmr.msrb.gmra.mxu3 %v829_v19 }
 0x1e9   :  { %988 = vmatmul.f32.vlgmr.msrb.gmra.mxu2 %v829_v19  ;;  %1021 = vmatmul.f32.gmra.mxu3 %v837_v29 }
 0x1f1   :  { %992 = vmatmul.f32.gmra.mxu2 %v837_v29 }
 0x250   :  { %v918_v37 = vpop.f32.mrf.mxu0 }
 0x252   :  { %v950_v8 = vpop.f32.mrf.mxu1 }
 0x254   :  { %v884_v3 = vpop.f32.mrf.mxu3 }
 0x258   :  { %v923_v45 = vpop.f32.mrf.mxu0 }
 0x25a   :  { %v956_v48 = vpop.f32.mrf.mxu1 }
 0x25c   :  { %v835_v6 = vpop.f32.mrf.mxu2  ;;  %v888_v35 = vpop.f32.mrf.mxu3 }
 0x25d   :  { %v836_v34 = vadd.f32 %v835_v6, %v801_v10 }
 0x25f   :  { %v885_v36 = vadd.f32 %v884_v3, %v836_v34 }
 0x261   :  { %v919_v40 = vadd.f32 %v918_v37, %v885_v36 }
 0x263   :  { %v951_v42 = vadd.f32 %v950_v8, %v919_v40 }
 0x264   :  { %v843_v38 = vpop.f32.mrf.mxu2  ;;  %v1018_v43 = vpop.f32.mrf.mxu3 }
 0x265   :  { %v844_v39 = vadd.f32 %v843_v38, %v802_v5 }
 0x267   :  { %v889_v41 = vadd.f32 %v888_v35, %v844_v39 }
 0x269   :  { %v924_v46 = vadd.f32 %v923_v45, %v889_v41 }
 0x26b   :  { %v957_v49 = vadd.f32 %v956_v48, %v924_v46  ;;  %v1271_v46 = vld [vmem:[#allocation10 + $0x8] sm:$0xff] }
 0x26c   :  { %v989_v44 = vpop.f32.mrf.mxu2  ;;  %v1022_v52 = vpop.f32.mrf.mxu3 }
 0x26d   :  { %v990_v11 = vadd.f32 %v989_v44, %v951_v42 }
 0x26f   :  { %v1019_v13 = vadd.f32 %v1018_v43, %v990_v11  ;;  %v1273_v43 = vld [vmem:[#allocation10 + $0x18] sm:$0xff]  ;;  %v1272_v11 = vld [vmem:[#allocation10 + $0x10] sm:$0xff] }
 0x270   :  { %v1292_v44 = vand.u32 4294901760, %v1273_v43 }
 0x271   :  { %v1025_v47 = vsel %vm150_vm0, %v1019_v13, -inf }
 0x272   :  { %1026 = vmax.xlane.f32.xlu0 %v1025_v47  ;;  %v1330_v45 = vsub.f32 %v1273_v43, %v1292_v44  ;;  %1293 = vmatpush.msrb.mxu2 %v1292_v44 }
 0x274   :  { %v993_v50 = vpop.f32.mrf.mxu2  ;;  %v1331_v47 = vand.u32 4294901760, %v1330_v45 }
 0x275   :  { %v994_v51 = vadd.f32 %v993_v50, %v957_v49  ;;  %v1296_v49 = vand.u32 4294901760, %v1271_v46  ;;  %v1270_v50 = vld [vmem:[#allocation10] sm:$0xff] }
 0x277   :  { %v1023_v53 = vadd.f32 %v1022_v52, %v994_v51  ;;  %v1332_v51 = vsub.f32 %v1330_v45, %v1331_v47 }
 0x279   :  { %v1029_v54 = vsel %vm1028_vm4, %v1023_v53, -inf }
 0x27a   :  { %1030 = vmax.xlane.f32.xlu1 %v1029_v54  ;;  %v1298_v54 = vand.u32 4294901760, %v1270_v50 }
 0x2e5   :  { %v1027_v55 = vpop.xlane.xlu0 %1026 }
 0x2e6   :  { %v1032_v56 = vsub.f32 %v1019_v13, %v1027_v55  ;;  %v1294_v13 = vand.u32 4294901760, %v1272_v11  ;;  %v1333_v55 = vand.u32 4294901760, %v1332_v51 }
 0x2e8   :  { %v1034_v57 = vmul.f32 1.442695, %v1032_v56  ;;  %v1336_v48 = vsub.f32 %v1272_v11, %v1294_v13  ;;  %1295 = vmatpush.msrb.mxu2 %v1294_v13  ;;  %1334 = vmatpush.msrb.mxu3 %v1333_v55 }
 0x2ea   :  { %3244 = vpow2.f32 %v1034_v57  ;;  %v1337_v52 = vand.u32 4294901760, %v1336_v48  ;;  %1297 = vmatpush.msrb.mxu2 %v1296_v49 }
 0x2ec   :  { %v1338_v56 = vsub.f32 %v1336_v48, %v1337_v52  ;;  %1299 = vmatpush.msrb.mxu2 %v1298_v54 }
 0x2ed   :  { %v1031_v58 = vpop.xlane.xlu1 %1030 }
 0x2ee   :  { %v1033_v59 = vsub.f32 %v1023_v53, %v1031_v58  ;;  %v1342_v53 = vsub.f32 %v1271_v46, %v1296_v49  ;;  %v1348_v58 = vsub.f32 %v1270_v50, %v1298_v54 }
 0x2f0   :  { %v3245_v60 = vpop.eup %3244  ;;  %v1036_v61 = vmul.f32 1.442695, %v1033_v59  ;;  %v1343_v57 = vand.u32 4294901760, %v1342_v53  ;;  %v1339_v59 = vand.u32 4294901760, %v1338_v56 }
 0x2f1   :  { %v1038_v62 = vsel %vm150_vm0, %v3245_v60, 0.0 }
 0x2f2   :  { %3246 = vpow2.f32 %v1036_v61  ;;  %1039 = vadd.xlane.f32.xlu1 %v1038_v62  ;;  %v1349_v61 = vand.u32 4294901760, %v1348_v58  ;;  %1340 = vmatpush.msrb.mxu3 %v1339_v59 }
 0x2f8   :  { %v3247_v63 = vpop.eup %3246 }
 0x2f9   :  { %v1041_v0 = vsel %vm1028_vm4, %v3247_v63, 0.0 }
 0x2fa   :  { %1042 = vadd.xlane.f32.xlu2 %v1041_v0 }
 0x365   :  { %v1040_v1 = vpop.xlane.xlu1 %1039 }
 0x366   :  { %3248 = vrcp.f32 %v1040_v1  ;;  %v1055_v16 = vand.u32 2147483648, %v1040_v1  ;;  %v1053_v19 = vand.u32 2147483647, %v1040_v1  ;;  %vm1049_vm6 = vweird.f32 %v1040_v1 }
 0x368   :  { %v1056_v22 = vor.u32 1.1754944e-38, %v1055_v16  ;;  %vm1054_vm8 = vcmp.eq.f32.partialorder %v1053_v19, 8.507059e+37 }
 0x36c   :  { %v3249_v2 = vpop.eup %3248 }
 0x36d   :  { %v1045_v4 = vmul.f32 %v3249_v2, %v1040_v1  ;;  %v1043_v12 = vpop.xlane.xlu2 %1042  ;;  %vm1050_vm5 = vweird.f32 %v3249_v2 }
 0x36e   :  { %3250 = vrcp.f32 %v1043_v12  ;;  %vm1051_vm7 = vmor %vm1049_vm6, %vm1050_vm5  ;;  %v1070_v29 = vand.u32 2147483648, %v1043_v12  ;;  %v1068_v31 = vand.u32 2147483647, %v1043_v12  ;;  %vm1064_vm10 = vweird.f32 %v1043_v12 }
 0x36f   :  { %v1046_v14 = vsub.f32 1.0, %v1045_v4 }
 0x370   :  { %v1071_v3 = vor.u32 1.1754944e-38, %v1070_v29  ;;  %vm1069_vm12 = vcmp.eq.f32.partialorder %v1068_v31, 8.507059e+37 }
 0x371   :  { %v1047_v18 = vmul.f32 %v3249_v2, %v1046_v14 }
 0x373   :  { %v1048_v20 = vadd.f32 %v3249_v2, %v1047_v18 }
 0x374   :  { %v3251_v21 = vpop.eup %3250 }
 0x375   :  { %v1052_v23 = vsel %vm1051_vm7, %v3249_v2, %v1048_v20  ;;  %v1060_v24 = vmul.f32 %v3251_v21, %v1043_v12  ;;  %vm1065_vm9 = vweird.f32 %v3251_v21 }
 0x376   :  { %v1057_v25 = vsel %vm1054_vm8, %v1056_v22, %v1052_v23  ;;  %vm1066_vm11 = vmor %vm1064_vm10, %vm1065_vm9  ;;  %vm2926_vm9 = vcmask 93184  }
 0x377   :  { %v1061_v27 = vsub.f32 1.0, %v1060_v24  ;;  %v1058_v28 = vmul.f32 %v3245_v60, %v1057_v25  ;;  %v1344_v60 = vsub.f32 %v1342_v53, %v1343_v57 }
 0x379   :  { %v1062_v30 = vmul.f32 %v3251_v21, %v1061_v27  ;;  %v1075_v7 = vsel %vm150_vm0, %v1058_v28, 0  ;;  %v1345_v62 = vand.u32 4294901760, %v1344_v60 }
 0x37a   :  { %v1098_v32 = vand.u32 4294901760, %v1075_v7 }
 0x37b   :  { %v1063_v33 = vadd.f32 %v3251_v21, %v1062_v30  ;;  %1346 = vmatpush.msrb.mxu3 %v1345_v62 }
 0x37c   :  { %1142 = vmatmul.f32.vlgmr.msra.gmra.mxu1 %v1098_v32  ;;  %v1099_v10 = vsub.f32 %v1075_v7, %v1098_v32 }
 0x37d   :  { %v1067_v6 = vsel %vm1066_vm11, %v3251_v21, %v1063_v33  ;;  %1410 = vmatpush.msra.mxu1 %v1292_v44 }
 0x37e   :  { %v1072_v34 = vsel %vm1069_vm12, %v1071_v3, %v1067_v6  ;;  %1172 = vmatmul.f32.vlgmr.msra.gmra.mxu2 %v1099_v10  ;;  %v1100_v35 = vand.u32 4294901760, %v1099_v10 }
 0x37f   :  { %v1073_v36 = vmul.f32 %v3247_v63, %v1072_v34  ;;  %1412 = vmatpush.msra.mxu1 %v1294_v13  ;;  %1445 = vmatpush.msra.mxu2 %v1331_v47  ;;  %v1350_v63 = vsub.f32 %v1348_v58, %v1349_v61 }
 0x380   :  { %1202 = vmatmul.f32.vlgmr.msra.gmra.mxu3 %v1100_v35  ;;  %v1101_v37 = vsub.f32 %v1099_v10, %v1100_v35 }
 0x381   :  { %v1078_v5 = vsel %vm150_vm0, %v1073_v36, 0  ;;  %1414 = vmatpush.msra.mxu1 %v1296_v49  ;;  %1449 = vmatpush.msra.mxu2 %v1337_v52  ;;  %v1351_v0 = vand.u32 4294901760, %v1350_v63  ;;  %vm1544_vm0 = vcmask 1043456  }
 0x382   :  { %v1102_v38 = vand.u32 4294901760, %v1101_v37  ;;  %v1106_v39 = vand.u32 4294901760, %v1078_v5 }
 0x383   :  { %1416 = vmatpush.msra.mxu1 %v1298_v54  ;;  %1453 = vmatpush.msra.mxu2 %v1343_v57 }
 0x384   :  { %1103 = vmatmul.f32.vlgmr.msra.gmra.mxu0 %v1102_v38  ;;  %1146 = vmatmul.f32.gmra.mxu1 %v1106_v39  ;;  %v1107_v40 = vsub.f32 %v1078_v5, %v1106_v39 }
 0x385   :  { %1376 = vmatpush.msra.mxu0 %v1330_v45  ;;  %1352 = vmatpush.msrb.mxu3 %v1351_v0  ;;  %v3473_v45 = vmov 1  }
 0x386   :  { %1177 = vmatmul.f32.gmra.mxu2 %v1107_v40  ;;  %v1108_v8 = vand.u32 4294901760, %v1107_v40  ;;  %3218 = vset.pattern.permute.xlu1 %v3473_v45  ;;  %v1742_v45 = vld [vmem:[#allocation11 + $0x28] sm:$0xff] }
 0x387   :  { %1379 = vmatpush.msra.mxu0 %v1336_v48  ;;  %1480 = vmatpush.msra.mxu3 %v1292_v44  ;;  %v3787_v44 = vld [vmem:[%s4164_s3] sm:$0xff]  ;;  %v3793_v48 = vld [vmem:[%s4164_s3 + $0x8] sm:$0xf]  ;;  %s3474_s3 = smov 96  }
 0x388   :  { %1208 = vmatmul.f32.gmra.mxu3 %v1108_v8  ;;  %v1109_v41 = vsub.f32 %v1107_v40, %v1108_v8  ;;  %1457 = vmatpush.msra.mxu2 %v1349_v61  ;;  %vm2844_vm1 = vcmp.eq.s32.totalorder %v3793_v48, 0  ;;  %vm2861_vm3 = vcmp.eq.s32.totalorder %v3787_v44, 1  ;;  %vm2902_vm4 = vcmp.eq.s32.totalorder %v3793_v48, 3 }
 0x389   :  { %1382 = vmatpush.msra.mxu0 %v1342_v53  ;;  %1482 = vmatpush.msra.mxu3 %v1294_v13  ;;  %vm2843_vm5 = vcmp.eq.s32.totalorder %v3787_v44, 0  ;;  %vm2882_vm6 = vcmp.eq.s32.totalorder %v3793_v48, 2  ;;  %vm2881_vm7 = vcmp.eq.s32.totalorder %v3787_v44, 2  ;;  %vm2901_vm8 = vcmp.eq.s32.totalorder %v3787_v44, 3 }
 0x38a   :  { %v1110_v42 = vand.u32 4294901760, %v1109_v41  ;;  %v3243_v41 = vld [vmem:[%s4171_s10] ss:$0 sm:$0xff] }
 0x38b   :  { %1385 = vmatpush.msra.mxu0 %v1348_v58  ;;  %1484 = vmatpush.msra.mxu3 %v1296_v49 }
 0x38c   :  { %1111 = vmatmul.f32.gmra.mxu0 %v1110_v42  ;;  %1262 = vmatmul.f32.vlgmr.msrb.gmra.mxu1 %v1098_v32 }
 0x38d   :  { %1486 = vmatpush.msra.mxu3 %v1298_v54  ;;  %1509 = vrot.lane.b32.xlu1 %v3243_v41, %s3472_s4 }
 0x394   :  { %1235 = vmatmul.f32.vlgmr.msrb.gmra.mxu0 %v1098_v32  ;;  %1266 = vmatmul.f32.gmra.mxu1 %v1106_v39 }
 0x395   :  { %1519 = vperm.xlu1 %3218, %v3787_v44  }
 0x39c   :  { %1239 = vmatmul.f32.gmra.mxu0 %v1106_v39 }
 0x39d   :  { %1522 = vperm.xlu1 %3218, %v3793_v48  }
 0x3f9   :  { %v1143_v1 = vpop.f32.mrf.mxu1 }
 0x401   :  { %v1104_v2 = vpop.f32.mrf.mxu0  ;;  %v1147_v4 = vpop.f32.mrf.mxu1 }
 0x402   :  { %v1144_v12 = vadd.f32 %v1143_v1, %v1104_v2  ;;  %v1173_v14 = vpop.f32.mrf.mxu2  ;;  %v1510_v2 = vpop.permute.xlu1 %1509 }
 0x403   :  { %v1203_v19 = vpop.f32.mrf.mxu3 }
 0x404   :  { %v1174_v18 = vadd.f32 %v1173_v14, %v1144_v12 }
 0x406   :  { %v1204_v20 = vadd.f32 %v1203_v19, %v1174_v18 }
 0x409   :  { %v1112_v16 = vpop.f32.mrf.mxu0  ;;  %v1263_v22 = vpop.f32.mrf.mxu1 }
 0x40a   :  { %v1148_v21 = vadd.f32 %v1147_v4, %v1112_v16  ;;  %v1178_v25 = vpop.f32.mrf.mxu2 }
 0x40b   :  { %v1209_v30 = vpop.f32.mrf.mxu3 }
 0x40c   :  { %v1179_v27 = vadd.f32 %v1178_v25, %v1148_v21  ;;  %v1520_v21 = vpop.permute.xlu1 %1519 }
 0x40d   :  { %vm1524_vm13 = vcmp.eq.s32.totalorder %v3626_v15, %v1520_v21  ;;  %v1738_v21 = vld [vmem:[#allocation11 + $0x8] sm:$0xff] }
 0x40e   :  { %v1210_v7 = vadd.f32 %v1209_v30, %v1179_v27 }
 0x411   :  { %v1236_v23 = vpop.f32.mrf.mxu0  ;;  %v1267_v10 = vpop.f32.mrf.mxu1 }
 0x412   :  { %v1237_v24 = vadd.f32 %v1236_v23, %v1204_v20 }
 0x414   :  { %v1264_v28 = vadd.f32 %v1263_v22, %v1237_v24  ;;  %v3183_v22 = vsel %vm1524_vm13, 1.0, %v3471_v17  ;;  %v1523_v24 = vpop.permute.xlu1 %1522 }
 0x415   :  { %v1539_v23 = vsel %vm1537_vm14, %v3183_v22, 0  ;;  %vm1525_vm15 = vcmp.eq.s32.totalorder %v3626_v15, %v1523_v24 }
 0x416   :  { %v1275_v29 = vsel %vm574_vm2, %v1264_v28, 0  ;;  %v3184_v27 = vsel %vm1525_vm15, 1.0, %v3471_v17 }
 0x417   :  { %v1300_v31 = vand.u32 4294901760, %v1275_v29  ;;  %v1542_v30 = vsel %vm1537_vm14, %v3184_v27, 0 }
 0x419   :  { %v1301_v32 = vsub.f32 %v1275_v29, %v1300_v31  ;;  %v1240_v33 = vpop.f32.mrf.mxu0  ;;  %1354 = vmatmul.f32.vlgmr.msrb.gmra.mxu3 %v1300_v31 }
 0x41a   :  { %v1241_v3 = vadd.f32 %v1240_v33, %v1210_v7  ;;  %v1574_v33 = vsub.f32 %v1542_v30, %v1542_v30 }
 0x41b   :  { %1388 = vmatmul.f32.vlgmr.msra.gmra.mxu0 %v1301_v32  ;;  %v1302_v6 = vand.u32 4294901760, %v1301_v32 }
 0x41c   :  { %v1268_v34 = vadd.f32 %v1267_v10, %v1241_v3 }
 0x41d   :  { %1420 = vmatmul.f32.vlgmr.msra.gmra.mxu1 %v1302_v6  ;;  %v1303_v35 = vsub.f32 %v1301_v32, %v1302_v6 }
 0x41e   :  { %v1278_v36 = vsel %vm574_vm2, %v1268_v34, 0 }
 0x41f   :  { %v1308_v37 = vand.u32 4294901760, %v1278_v36  ;;  %v1304_v5 = vand.u32 4294901760, %v1303_v35  ;;  %v1575_v35 = vand.u32 4294901760, %v1574_v33 }
 0x421   :  { %1305 = vmatmul.f32.vlgmr.msrb.gmra.mxu2 %v1304_v5  ;;  %1358 = vmatmul.f32.gmra.mxu3 %v1308_v37  ;;  %v1309_v38 = vsub.f32 %v1278_v36, %v1308_v37  ;;  %v1576_v5 = vsub.f32 %v1574_v33, %v1575_v35 }
 0x423   :  { %1393 = vmatmul.f32.gmra.mxu0 %v1309_v38  ;;  %v1310_v39 = vand.u32 4294901760, %v1309_v38 }
 0x425   :  { %1426 = vmatmul.f32.gmra.mxu1 %v1310_v39  ;;  %v1311_v40 = vsub.f32 %v1309_v38, %v1310_v39 }
 0x427   :  { %v1312_v8 = vand.u32 4294901760, %v1311_v40  ;;  %v1577_v40 = vand.u32 4294901760, %v1576_v5 }
 0x429   :  { %1313 = vmatmul.f32.gmra.mxu2 %v1312_v8  ;;  %1488 = vmatmul.f32.vlgmr.msra.gmra.mxu3 %v1300_v31  ;;  %v1752_v8 = vld [vmem:[#allocation11 + $0x78] sm:$0xff] }
 0x42a   :  { %v1775_v41 = vand.u32 4294901760, %v1752_v8 }
 0x431   :  { %1459 = vmatmul.f32.vlgmr.msra.gmra.mxu2 %v1300_v31  ;;  %1492 = vmatmul.f32.gmra.mxu3 %v1308_v37 }
 0x439   :  { %1463 = vmatmul.f32.gmra.mxu2 %v1308_v37 }
 0x498   :  { %v1389_v13 = vpop.f32.mrf.mxu0 }
 0x49a   :  { %v1421_v47 = vpop.f32.mrf.mxu1 }
 0x49c   :  { %v1355_v42 = vpop.f32.mrf.mxu3 }
 0x4a0   :  { %v1394_v52 = vpop.f32.mrf.mxu0 }
 0x4a2   :  { %v1427_v55 = vpop.f32.mrf.mxu1 }
 0x4a4   :  { %v1306_v43 = vpop.f32.mrf.mxu2  ;;  %v1359_v11 = vpop.f32.mrf.mxu3 }
 0x4a5   :  { %v1356_v54 = vadd.f32 %v1355_v42, %v1306_v43  ;;  %v1747_v42 = vld [vmem:[#allocation11 + $0x50] sm:$0xff]  ;;  %v1813_v43 = vsub.f32 %v1752_v8, %v1775_v41 }
 0x4a7   :  { %v1390_v58 = vadd.f32 %v1389_v13, %v1356_v54  ;;  %v1814_v13 = vand.u32 4294901760, %v1813_v43 }
 0x4a9   :  { %v1422_v62 = vadd.f32 %v1421_v47, %v1390_v58  ;;  %v1779_v47 = vand.u32 4294901760, %v1742_v45 }
 0x4ac   :  { %v1314_v46 = vpop.f32.mrf.mxu2  ;;  %v1489_v50 = vpop.f32.mrf.mxu3 }
 0x4ad   :  { %v1360_v49 = vadd.f32 %v1359_v11, %v1314_v46  ;;  %v1777_v11 = vand.u32 4294901760, %v1747_v42 }
 0x4af   :  { %v1395_v53 = vadd.f32 %v1394_v52, %v1360_v49  ;;  %v1819_v46 = vsub.f32 %v1747_v42, %v1777_v11  ;;  %v1737_v49 = vld [vmem:[#allocation11] sm:$0xff]  ;;  %v1825_v52 = vsub.f32 %v1742_v45, %v1779_v47 }
 0x4b1   :  { %v1428_v56 = vadd.f32 %v1427_v55, %v1395_v53  ;;  %v1781_v53 = vand.u32 4294901760, %v1737_v49 }
 0x4b4   :  { %v1460_v51 = vpop.f32.mrf.mxu2  ;;  %v1493_v60 = vpop.f32.mrf.mxu3 }
 0x4b5   :  { %v1461_v63 = vadd.f32 %v1460_v51, %v1422_v62  ;;  %v1820_v51 = vand.u32 4294901760, %v1819_v46 }
 0x4b7   :  { %v1490_v0 = vadd.f32 %v1489_v50, %v1461_v63  ;;  %v1815_v50 = vsub.f32 %v1813_v43, %v1814_v13  ;;  %v1821_v55 = vsub.f32 %v1819_v46, %v1820_v51 }
 0x4b9   :  { %v1816_v54 = vand.u32 4294901760, %v1815_v50  ;;  %v1822_v58 = vand.u32 4294901760, %v1821_v55 }
 0x4bc   :  { %v1464_v57 = vpop.f32.mrf.mxu2 }
 0x4bd   :  { %v1465_v59 = vadd.f32 %v1464_v57, %v1428_v56  ;;  %v1826_v56 = vand.u32 4294901760, %v1825_v52  ;;  %v1831_v57 = vsub.f32 %v1737_v49, %v1781_v53 }
 0x4bf   :  { %v1494_v61 = vadd.f32 %v1493_v60, %v1465_v59  ;;  %v1827_v59 = vsub.f32 %v1825_v52, %v1826_v56  ;;  %v1832_v60 = vand.u32 4294901760, %v1831_v57 }
 0x4c1   :  { %1500 = vrot.lane.b32.xlu2 %v1494_v61, %s3472_s4  ;;  %v1828_v61 = vand.u32 4294901760, %v1827_v59  ;;  %v1833_v62 = vsub.f32 %v1831_v57, %v1832_v60 }
 0x4c3   :  { %v1834_v63 = vand.u32 4294901760, %v1833_v62 }
 0x4c9   :  { %1498 = vrot.lane.b32.xlu2 %v1490_v0, %s3472_s4 }
 0x51b   :  { %v1501_v1 = vpop.permute.xlu2 %1500 }
 0x51c   :  { %v1505_v4 = vadd.f32 %v1501_v1, %v3761_v26  ;;  %v1566_v26 = vsub.f32 %v1539_v23, %v1539_v23  ;;  %v1753_v1 = vld [vmem:[#allocation11 + $0x80] sm:$0xff] }
 0x51e   :  { %v1513_v12 = vadd.f32 %v1510_v2, %v1505_v4  ;;  %v1748_v4 = vld [vmem:[#allocation11 + $0x58] sm:$0xff] }
 0x520   :  { %v1515_v14 = vmax.f32 %v1513_v12, 0.0 }
 0x522   :  { %1534 = vrot.lane.b32.xlu2 %v1515_v14, %s3474_s3  ;;  %v3819_v14 = vand.u32 4294901760, %v1748_v4 }
 0x523   :  { %v1499_v16 = vpop.permute.xlu2 %1498 }
 0x524   :  { %v1504_v18 = vadd.f32 %v1499_v16, %v3756_v9  ;;  %v1567_v9 = vand.u32 4294901760, %v1566_v26  ;;  %v1743_v16 = vld [vmem:[#allocation11 + $0x30] sm:$0xff] }
 0x526   :  { %v1512_v19 = vadd.f32 %v1510_v2, %v1504_v18  ;;  %v1568_v7 = vsub.f32 %v1566_v26, %v1567_v9  ;;  %v3813_v2 = vand.u32 4294901760, %v1753_v1 }
 0x528   :  { %v1514_v20 = vmax.f32 %v1512_v19, 0.0  ;;  %v1569_v15 = vand.u32 4294901760, %v1568_v7  ;;  %v3817_v12 = vsub.f32 %v1753_v1, %v3813_v2  ;;  %v3823_v19 = vand.u32 4294901760, %v1743_v16 }
 0x52a   :  { %1532 = vrot.lane.b32.xlu2 %v1514_v20, %s3474_s3  ;;  %v2030_v18 = vand.u32 4294901760, %v3817_v12  ;;  %v3826_v20 = vsub.f32 %v1748_v4, %v3819_v14 }
 0x52c   :  { %v2031_v24 = vsub.f32 %v3817_v12, %v2030_v18 }
 0x57c   :  { %v1535_v25 = vpop.permute.xlu2 %1534 }
 0x57d   :  { %v1545_v28 = vsel %vm1544_vm0, %v1535_v25, 0  ;;  %v3831_v25 = vand.u32 4294901760, %v1738_v21 }
 0x57e   :  { %v1561_v29 = vand.u32 4294901760, %v1545_v28 }
 0x57f   :  { %v3840_v30 = vsub.f32 %v1738_v21, %v3831_v25 }
 0x580   :  { %v1597_v31 = vsub.f32 %v1545_v28, %v1561_v29  ;;  %1562 = vmatpush.msrb.mxu0 %v1561_v29  ;;  %1663 = vmatpush.msrb.mxu3 %v1561_v29 }
 0x582   :  { %v1598_v32 = vand.u32 4294901760, %v1597_v31  ;;  %1633 = vmatpush.msrb.mxu2 %v1597_v31 }
 0x584   :  { %v1599_v3 = vsub.f32 %v1597_v31, %v1598_v32  ;;  %v1533_v10 = vpop.permute.xlu2 %1532 }
 0x585   :  { %v1563_v6 = vand.u32 4294901760, %v1533_v10 }
 0x586   :  { %v1600_v34 = vand.u32 4294901760, %v1599_v3 }
 0x587   :  { %v1603_v36 = vsub.f32 %v1533_v10, %v1563_v6  ;;  %1564 = vmatpush.msrb.mxu0 %v1563_v6  ;;  %1665 = vmatpush.msrb.mxu3 %v1563_v6 }
 0x588   :  { %1570 = vmatmul.f32.vlgmr.msrb.gmra.mxu0 %v1569_v15  ;;  %1601 = vmatpush.msrb.mxu1 %v1600_v34 }
 0x589   :  { %1669 = vmatmul.f32.vlgmr.msrb.gmra.mxu3 %v1567_v9  ;;  %1696 = vmatpush.msra.mxu0 %v1598_v32  ;;  %v1604_v37 = vand.u32 4294901760, %v1603_v36  ;;  %v2032_v9 = vand.u32 4294901760, %v2031_v24  ;;  %v2048_v32 = vand.u32 4294901760, %v3840_v30 }
 0x58a   :  { %1636 = vmatpush.msrb.mxu2 %v1603_v36  ;;  %1817 = vmatpush.msra.mxu3 %v1816_v54 }
 0x58b   :  { %1639 = vmatmul.f32.vlgmr.msrb.gmra.mxu2 %v1566_v26  ;;  %1700 = vmatpush.msra.mxu0 %v1604_v37  ;;  %v1605_v38 = vsub.f32 %v1603_v36, %v1604_v37  ;;  %v2036_v26 = vand.u32 4294901760, %v3826_v20  ;;  %v2049_v15 = vsub.f32 %v3840_v30, %v2048_v32 }
 0x58c   :  { %1776 = vmatpush.msra.mxu2 %v1775_v41  ;;  %1823 = vmatpush.msra.mxu3 %v1822_v58  ;;  %v1744_v58 = vld [vmem:[#allocation11 + $0x38] sm:$0xff] }
 0x58d   :  { %v1606_v39 = vand.u32 4294901760, %v1605_v38  ;;  %1859 = vmatpush.msrb.mxu0 %v1813_v43  ;;  %v2037_v28 = vsub.f32 %v3826_v20, %v2036_v26  ;;  %v2050_v34 = vand.u32 4294901760, %v2049_v15  ;;  %v1750_v15 = vld [vmem:[#allocation11 + $0x68] sm:$0xff] }
 0x58e   :  { %1778 = vmatpush.msra.mxu2 %v1777_v11  ;;  %1829 = vmatpush.msra.mxu3 %v1828_v61  ;;  %v3873_v61 = vand.u32 4294901760, %v1744_v58 }
 0x58f   :  { %1607 = vmatpush.msrb.mxu1 %v1606_v39  ;;  %1862 = vmatpush.msrb.mxu0 %v1819_v46  ;;  %v2038_v31 = vand.u32 4294901760, %v2037_v28 }
 0x590   :  { %1578 = vmatmul.f32.gmra.mxu0 %v1577_v40  ;;  %3185 = vmatmul.msk.f32.vlgmr.msrb.gmra.mxu1 %vm1537_vm14, %v3183_v22 }
 0x591   :  { %1675 = vmatmul.f32.gmra.mxu3 %v1575_v35  ;;  %1725 = vmatpush.msra.mxu1 %v1561_v29 }
 0x592   :  { %1780 = vmatpush.msra.mxu2 %v1779_v47  ;;  %1865 = vmatpush.msrb.mxu0 %v1825_v52  ;;  %v1749_v52 = vld [vmem:[#allocation11 + $0x60] sm:$0xff] }
 0x593   :  { %1644 = vmatmul.f32.gmra.mxu2 %v1574_v33  ;;  %1727 = vmatpush.msra.mxu1 %v1563_v6 }
 0x594   :  { %1782 = vmatpush.msra.mxu2 %v1781_v53  ;;  %1868 = vmatpush.msrb.mxu0 %v1831_v57 }
 0x595   :  { %1893 = vmatpush.msrb.mxu1 %v1775_v41  ;;  %1835 = vmatpush.msra.mxu3 %v1834_v63 }
 0x596   :  { %1928 = vmatpush.msrb.mxu2 %v1814_v13 }
 0x597   :  { %1895 = vmatpush.msrb.mxu1 %v1777_v11  ;;  %1963 = vmatpush.msrb.mxu3 %v1775_v41 }
 0x598   :  { %3186 = vmatmul.msk.f32.gmra.mxu1 %vm1537_vm14, %v3184_v27  ;;  %3187 = vmatmul.msk.f32.vlgmr.msra.gmra.mxu0 %vm1537_vm14, %v3183_v22 }
 0x599   :  { %1897 = vmatpush.msrb.mxu1 %v1779_v47  ;;  %1932 = vmatpush.msrb.mxu2 %v1820_v51 }
 0x59a   :  { %1965 = vmatpush.msrb.mxu3 %v1777_v11  ;;  %1992 = vmatpush.msra.mxu0 %v3813_v2 }
 0x59b   :  { %1899 = vmatpush.msrb.mxu1 %v1781_v53  ;;  %1936 = vmatpush.msrb.mxu2 %v1826_v56  ;;  %v3864_v56 = vand.u32 4294901760, %v1749_v52 }
 0x59c   :  { %1967 = vmatpush.msrb.mxu3 %v1779_v47  ;;  %1994 = vmatpush.msra.mxu0 %v3819_v14  ;;  %v1754_v47 = vld [vmem:[#allocation11 + $0x88] sm:$0xff] }
 0x59d   :  { %1940 = vmatpush.msrb.mxu2 %v1832_v60  ;;  %v3854_v50 = vand.u32 4294901760, %v1754_v47  ;;  %v3871_v60 = vsub.f32 %v1749_v52, %v3864_v56  ;;  %v3196_v52 = vsel %vm2882_vm6, 1.0, %v3471_v17 }
 0x59e   :  { %1969 = vmatpush.msrb.mxu3 %v1781_v53  ;;  %1996 = vmatpush.msra.mxu0 %v3823_v19 }
 0x59f   :  { %v3862_v55 = vsub.f32 %v1754_v47, %v3854_v50 }
 0x5a0   :  { %3188 = vmatmul.msk.f32.gmra.mxu0 %vm1537_vm14, %v3184_v27  ;;  %3189 = vmatmul.msk.f32.vlgmr.msra.gmra.mxu1 %vm1537_vm14, %v3183_v22 }
 0x5a1   :  { %1998 = vmatpush.msra.mxu0 %v3831_v25  ;;  %2033 = vmatpush.msra.mxu1 %v2032_v9  ;;  %v2246_v63 = vand.u32 4294901760, %v3862_v55 }
 0x5a3   :  { %2039 = vmatpush.msra.mxu1 %v2038_v31 }
 0x5a8   :  { %3190 = vmatmul.msk.f32.gmra.mxu1 %vm1537_vm14, %v3184_v27  ;;  %v3834_v27 = vsub.f32 %v1743_v16, %v3823_v19  ;;  %v2252_v16 = vand.u32 4294901760, %v3871_v60 }
 0x5aa   :  { %v2042_v29 = vand.u32 4294901760, %v3834_v27 }
 0x5ac   :  { %v2043_v7 = vsub.f32 %v3834_v27, %v2042_v29 }
 0x5ae   :  { %v2044_v10 = vand.u32 4294901760, %v2043_v7 }
 0x5b0   :  { %2045 = vmatpush.msra.mxu1 %v2044_v10  ;;  %v1755_v10 = vld [vmem:[#allocation11 + $0x90] sm:$0xff] }
 0x5b2   :  { %2051 = vmatpush.msra.mxu1 %v2050_v34  ;;  %v3946_v34 = vand.u32 4294901760, %v1750_v15 }
 0x605   :  { %v1571_v0 = vpop.f32.mrf.mxu0 }
 0x60c   :  { %v1670_v36 = vpop.f32.mrf.mxu3 }
 0x60d   :  { %v1579_v22 = vpop.f32.mrf.mxu0  ;;  %v1610_v23 = vpop.f32.mrf.mxu1 }
 0x60e   :  { %v1611_v33 = vadd.f32 %v1610_v23, %v1571_v0  ;;  %v1640_v3 = vpop.f32.mrf.mxu2  ;;  %v1739_v0 = vld [vmem:[#allocation11 + $0x10] sm:$0xff] }
 0x60f   :  { %v3888_v21 = vand.u32 4294901760, %v1739_v0 }
 0x610   :  { %v1641_v35 = vadd.f32 %v1640_v3, %v1611_v33 }
 0x611   :  { %v3902_v24 = vsub.f32 %v1739_v0, %v3888_v21 }
 0x612   :  { %v1671_v38 = vadd.f32 %v1670_v36, %v1641_v35  ;;  %v1745_v35 = vld [vmem:[#allocation11 + $0x40] sm:$0xff] }
 0x613   :  { %v3951_v36 = vand.u32 4294901760, %v1745_v35 }
 0x614   :  { %v1676_v11 = vpop.f32.mrf.mxu3 }
 0x615   :  { %v1614_v6 = vpop.f32.mrf.mxu1  ;;  %v1703_v37 = vpop.f32.mrf.mxu0 }
 0x616   :  { %v1615_v5 = vadd.f32 %v1614_v6, %v1579_v22  ;;  %v1704_v39 = vadd.f32 %v1703_v37, %v1671_v38  ;;  %v1645_v40 = vpop.f32.mrf.mxu2  ;;  %v3956_v37 = vsub.f32 %v1750_v15, %v3946_v34 }
 0x618   :  { %v1646_v41 = vadd.f32 %v1645_v40, %v1615_v5  ;;  %v1740_v5 = vld [vmem:[#allocation11 + $0x18] sm:$0xff]  ;;  %v3965_v40 = vsub.f32 %v1745_v35, %v3951_v36 }
 0x61a   :  { %v1677_v46 = vadd.f32 %v1676_v11, %v1646_v41  ;;  %v3198_v41 = vsel %vm2902_vm4, 1.0, %v3471_v17 }
 0x61d   :  { %v1730_v8 = vpop.f32.mrf.mxu1  ;;  %v1707_v45 = vpop.f32.mrf.mxu0 }
 0x61e   :  { %v1731_v42 = vadd.f32 %v1730_v8, %v1704_v39  ;;  %v1708_v51 = vadd.f32 %v1707_v45, %v1677_v46  ;;  %v3960_v39 = vand.u32 4294901760, %v1740_v5  ;;  %v3193_v8 = vsel %vm2861_vm3, 1.0, %v3471_v17 }
 0x61f   :  { %v3232_v45 = vpack.i.bf16 %v3198_v41, %v3193_v8  ;;  %v2474_v46 = vand.u32 4294901760, %v3965_v40 }
 0x620   :  { %v1758_v43 = vsel %vm574_vm2, %v1731_v42, 0  ;;  %v2468_v42 = vand.u32 4294901760, %v3956_v37 }
 0x621   :  { %v3848_v13 = vand.u32 4294901760, %v1758_v43 }
 0x622   :  { %v2469_v47 = vsub.f32 %v3956_v37, %v2468_v42 }
 0x623   :  { %v3851_v49 = vsub.f32 %v1758_v43, %v3848_v13  ;;  %1837 = vmatmul.f32.vlgmr.msra.gmra.mxu3 %v3848_v13  ;;  %v3976_v43 = vsub.f32 %v1740_v5, %v3960_v39 }
 0x624   :  { %2109 = vmatpush.msra.mxu3 %v3813_v2 }
 0x625   :  { %v1734_v53 = vpop.f32.mrf.mxu1  ;;  %1871 = vmatmul.f32.vlgmr.msrb.gmra.mxu0 %v3851_v49  ;;  %v3859_v54 = vand.u32 4294901760, %v3851_v49 }
 0x626   :  { %v1735_v57 = vadd.f32 %v1734_v53, %v1708_v51  ;;  %2111 = vmatpush.msra.mxu3 %v3819_v14  ;;  %2144 = vmatpush.msrb.mxu0 %v2030_v18  ;;  %v3886_v18 = vsub.f32 %v1744_v58, %v3873_v61  ;;  %v3191_v51 = vsel %vm2843_vm5, 1.0, %v3471_v17  ;;  %v2480_v53 = vand.u32 4294901760, %v3976_v43 }
 0x627   :  { %1903 = vmatmul.f32.vlgmr.msrb.gmra.mxu1 %v3859_v54  ;;  %v1786_v59 = vsub.f32 %v3851_v49, %v3859_v54  ;;  %v3226_v58 = vpack.i.bf16 %v3191_v51, %v3196_v52 }
 0x628   :  { %v1761_v62 = vsel %vm574_vm2, %v1735_v57, 0  ;;  %2113 = vmatpush.msra.mxu3 %v3823_v19  ;;  %2148 = vmatpush.msrb.mxu0 %v2036_v26  ;;  %v2258_v23 = vand.u32 4294901760, %v3886_v18  ;;  %vm2862_vm2 = vcmp.eq.s32.totalorder %v3793_v48, 1  ;;  %v2475_v48 = vsub.f32 %v3965_v40, %v2474_v46 }
 0x629   :  { %v3878_v1 = vand.u32 4294901760, %v1761_v62  ;;  %v3880_v4 = vand.u32 4294901760, %v1786_v59  ;;  %2179 = vmatpush.msrb.mxu1 %v3813_v2  ;;  %v2247_v2 = vsub.f32 %v3862_v55, %v2246_v63  ;;  %v2481_v59 = vsub.f32 %v3976_v43, %v2480_v53 }
 0x62a   :  { %2115 = vmatpush.msra.mxu3 %v3831_v25  ;;  %2152 = vmatpush.msrb.mxu0 %v2042_v29 }
 0x62b   :  { %v3891_v22 = vsub.f32 %v1761_v62, %v3878_v1  ;;  %1788 = vmatmul.f32.vlgmr.msra.gmra.mxu2 %v3880_v4  ;;  %1841 = vmatmul.f32.gmra.mxu3 %v3878_v1  ;;  %v2248_v28 = vand.u32 4294901760, %v2247_v2  ;;  %v1756_v62 = vld [vmem:[#allocation11 + $0x98] sm:$0xff] }
 0x62c   :  { %2181 = vmatpush.msrb.mxu1 %v3819_v14  ;;  %2075 = vmatpush.msra.mxu2 %v3817_v12  ;;  %v2253_v12 = vsub.f32 %v3871_v60, %v2252_v16  ;;  %v2264_v14 = vand.u32 4294901760, %v3902_v24 }
 0x62d   :  { %1876 = vmatmul.f32.gmra.mxu0 %v3891_v22  ;;  %v3906_v26 = vand.u32 4294901760, %v3891_v22 }
 0x62e   :  { %2156 = vmatpush.msrb.mxu0 %v2048_v32  ;;  %2183 = vmatpush.msrb.mxu1 %v3823_v19  ;;  %v2259_v19 = vsub.f32 %v3886_v18, %v2258_v23  ;;  %v2254_v31 = vand.u32 4294901760, %v2253_v12  ;;  %v2265_v7 = vsub.f32 %v3902_v24, %v2264_v14  ;;  %v3475_v32 = vmov 2  }
 0x62f   :  { %1909 = vmatmul.f32.gmra.mxu1 %v3906_v26  ;;  %v1794_v9 = vsub.f32 %v3891_v22, %v3906_v26  ;;  %2078 = vmatpush.msra.mxu2 %v3826_v20 }
 0x630   :  { %2185 = vmatpush.msrb.mxu1 %v3831_v25  ;;  %v2260_v20 = vand.u32 4294901760, %v2259_v19  ;;  %v3192_v25 = vsel %vm2844_vm1, 1.0, %v3471_v17  ;;  %3219 = vset.pattern.permute.xlu0 %v3475_v32  ;;  %v2266_v3 = vand.u32 4294901760, %v2265_v7 }
 0x631   :  { %v3923_v29 = vand.u32 4294901760, %v1794_v9  ;;  %2081 = vmatpush.msra.mxu2 %v3834_v27  ;;  %v3194_v27 = vsel %vm2862_vm2, 1.0, %v3471_v17  ;;  %3231 = vset.pattern.permute.xlu1 %v3475_v32 }
 0x632   :  { %v3220_v33 = vpack.i.bf16 %v3194_v27, %v3192_v25  ;;  %3225 = vset.pattern.permute.xlu2 %v3475_v32  ;;  %3233 = vperm.xlu1 %3231, %v3232_v45  }
 0x633   :  { %1796 = vmatmul.f32.gmra.mxu2 %v3923_v29  ;;  %1971 = vmatmul.f32.vlgmr.msrb.gmra.mxu3 %v3848_v13 }
 0x634   :  { %2084 = vmatpush.msra.mxu2 %v3840_v30  ;;  %2249 = vmatpush.msrb.mxu3 %v2248_v28  ;;  %v3939_v30 = vand.u32 4294901760, %v1755_v10 }
 0x635   :  { %2004 = vmatmul.f32.vlgmr.msra.gmra.mxu0 %v3880_v4  ;;  %3221 = vperm.xlu0 %3219, %v3220_v33  }
 0x636   :  { %2255 = vmatpush.msrb.mxu3 %v2254_v31  ;;  %2291 = vmatpush.msra.mxu0 %v3862_v55  ;;  %v3944_v6 = vsub.f32 %v1755_v10, %v3939_v30  ;;  %v4020_v55 = vand.u32 4294901760, %v1756_v62  ;;  %v3195_v10 = vsel %vm2881_vm7, 1.0, %v3471_v17 }
 0x637   :  { %2053 = vmatmul.f32.vlgmr.msra.gmra.mxu1 %v3848_v13  ;;  %3227 = vperm.xlu2 %3225, %v3226_v58  }
 0x638   :  { %2261 = vmatpush.msrb.mxu3 %v2260_v20  ;;  %2294 = vmatpush.msra.mxu0 %v3871_v60  ;;  %v2462_v38 = vand.u32 4294901760, %v3944_v6  ;;  %v4027_v60 = vsub.f32 %v1756_v62, %v4020_v55 }
 0x639   :  { %2325 = vmatpush.msra.mxu1 %v3854_v50 }
 0x63a   :  { %2267 = vmatpush.msrb.mxu3 %v2266_v3  ;;  %2297 = vmatpush.msra.mxu0 %v3886_v18  ;;  %v2463_v11 = vsub.f32 %v3944_v6, %v2462_v38  ;;  %v2678_v2 = vand.u32 4294901760, %v4027_v60 }
 0x63b   :  { %1942 = vmatmul.f32.vlgmr.msrb.gmra.mxu2 %v3848_v13  ;;  %1975 = vmatmul.f32.gmra.mxu3 %v3878_v1 }
 0x63c   :  { %2327 = vmatpush.msra.mxu1 %v3864_v56  ;;  %2208 = vmatpush.msrb.mxu2 %v3854_v50  ;;  %v2464_v57 = vand.u32 4294901760, %v2463_v11  ;;  %v2679_v28 = vsub.f32 %v4027_v60, %v2678_v2 }
 0x63d   :  { %2012 = vmatmul.f32.gmra.mxu0 %v3923_v29 }
 0x63e   :  { %2300 = vmatpush.msra.mxu0 %v3902_v24  ;;  %2329 = vmatpush.msra.mxu1 %v3873_v61  ;;  %v2680_v20 = vand.u32 4294901760, %v2679_v28 }
 0x63f   :  { %2057 = vmatmul.f32.gmra.mxu1 %v3878_v1  ;;  %2210 = vmatpush.msrb.mxu2 %v3864_v56 }
 0x640   :  { %2331 = vmatpush.msra.mxu1 %v3888_v21 }
 0x641   :  { %2212 = vmatpush.msrb.mxu2 %v3873_v61 }
 0x643   :  { %1946 = vmatmul.f32.gmra.mxu2 %v3878_v1  ;;  %2119 = vmatmul.f32.vlgmr.msra.gmra.mxu3 %v3859_v54 }
 0x644   :  { %2214 = vmatpush.msrb.mxu2 %v3888_v21  ;;  %2395 = vmatpush.msra.mxu3 %v3854_v50  ;;  %v2470_v50 = vand.u32 4294901760, %v2469_v47 }
 0x645   :  { %2158 = vmatmul.f32.vlgmr.msrb.gmra.mxu0 %v3848_v13 }
 0x646   :  { %2397 = vmatpush.msra.mxu3 %v3864_v56  ;;  %2424 = vmatpush.msrb.mxu0 %v3939_v30  ;;  %v2476_v56 = vand.u32 4294901760, %v2475_v48 }
 0x647   :  { %2187 = vmatmul.f32.vlgmr.msrb.gmra.mxu1 %v3848_v13 }
 0x648   :  { %2399 = vmatpush.msra.mxu3 %v3873_v61  ;;  %2426 = vmatpush.msrb.mxu0 %v3946_v34  ;;  %v2482_v61 = vand.u32 4294901760, %v2481_v59 }
 0x649   :  { %2465 = vmatpush.msrb.mxu1 %v2464_v57 }
 0x64a   :  { %2401 = vmatpush.msra.mxu3 %v3888_v21  ;;  %2428 = vmatpush.msrb.mxu0 %v3951_v36 }
 0x64b   :  { %2087 = vmatmul.f32.vlgmr.msra.gmra.mxu2 %v3851_v49  ;;  %2125 = vmatmul.f32.gmra.mxu3 %v3906_v26 }
 0x64c   :  { %2471 = vmatpush.msrb.mxu1 %v2470_v50  ;;  %2360 = vmatpush.msra.mxu2 %v2246_v63  ;;  %v1751_v63 = vld [vmem:[#allocation11 + $0x70] sm:$0xff] }
 0x64d   :  { %2162 = vmatmul.f32.gmra.mxu0 %v3878_v1  ;;  %v4029_v0 = vand.u32 4294901760, %v1751_v63 }
 0x64e   :  { %2430 = vmatpush.msrb.mxu0 %v3960_v39  ;;  %2477 = vmatpush.msrb.mxu1 %v2476_v56 }
 0x64f   :  { %2191 = vmatmul.f32.gmra.mxu1 %v3878_v1  ;;  %2364 = vmatpush.msra.mxu2 %v2252_v16  ;;  %v1746_v16 = vld [vmem:[#allocation11 + $0x48] sm:$0xff]  ;;  %v4036_v18 = vsub.f32 %v1751_v63, %v4029_v0 }
 0x650   :  { %2483 = vmatpush.msrb.mxu1 %v2482_v61  ;;  %v4038_v21 = vand.u32 4294901760, %v1746_v16 }
 0x651   :  { %2368 = vmatpush.msra.mxu2 %v2258_v23  ;;  %v1741_v23 = vld [vmem:[#allocation11 + $0x20] sm:$0xff] }
 0x652   :  { %v4044_v24 = vsub.f32 %v1746_v16, %v4038_v21  ;;  %v4046_v12 = vand.u32 4294901760, %v1741_v23 }
 0x653   :  { %2092 = vmatmul.f32.gmra.mxu2 %v3891_v22  ;;  %2269 = vmatmul.f32.vlgmr.msrb.gmra.mxu3 %v3848_v13 }
 0x654   :  { %2372 = vmatpush.msra.mxu2 %v2264_v14  ;;  %2541 = vmatpush.msrb.mxu3 %v3939_v30  ;;  %v2684_v14 = vand.u32 4294901760, %v4036_v18  ;;  %v4055_v9 = vsub.f32 %v1741_v23, %v4046_v12  ;;  %v2690_v19 = vand.u32 4294901760, %v4044_v24 }
 0x655   :  { %2303 = vmatmul.f32.vlgmr.msra.gmra.mxu0 %v3851_v49 }
 0x656   :  { %2543 = vmatpush.msrb.mxu3 %v3946_v34  ;;  %2576 = vmatpush.msra.mxu0 %v2462_v38  ;;  %v2685_v31 = vsub.f32 %v4036_v18, %v2684_v14  ;;  %v2696_v7 = vand.u32 4294901760, %v4055_v9  ;;  %v2691_v25 = vsub.f32 %v4044_v24, %v2690_v19 }
 0x657   :  { %2335 = vmatmul.f32.vlgmr.msra.gmra.mxu1 %v3859_v54 }
 0x658   :  { %2545 = vmatpush.msrb.mxu3 %v3951_v36  ;;  %2580 = vmatpush.msra.mxu0 %v2468_v42  ;;  %v2686_v27 = vand.u32 4294901760, %v2685_v31  ;;  %v2697_v32 = vsub.f32 %v4055_v9, %v2696_v7  ;;  %v2692_v33 = vand.u32 4294901760, %v2691_v25 }
 0x659   :  { %2611 = vmatpush.msra.mxu1 %v3939_v30  ;;  %v3197_v30 = vsel %vm2901_vm8, 1.0, %v3471_v17 }
 0x65a   :  { %2547 = vmatpush.msrb.mxu3 %v3960_v39  ;;  %2584 = vmatpush.msra.mxu0 %v2474_v46  ;;  %v2698_v3 = vand.u32 4294901760, %v2697_v32  ;;  %v3237_v15 = vpack.i.bf16 %v3197_v30, %v3195_v10 }
 0x65b   :  { %2220 = vmatmul.f32.vlgmr.msrb.gmra.mxu2 %v3880_v4  ;;  %2273 = vmatmul.f32.gmra.mxu3 %v3878_v1 }
 0x65c   :  { %2613 = vmatpush.msra.mxu1 %v3946_v34  ;;  %2507 = vmatpush.msrb.mxu2 %v3944_v6 }
 0x65d   :  { %2308 = vmatmul.f32.gmra.mxu0 %v3891_v22  ;;  %3238 = vperm.xlu2 %3225, %v3237_v15  }
 0x65e   :  { %2588 = vmatpush.msra.mxu0 %v2480_v53  ;;  %2615 = vmatpush.msra.mxu1 %v3951_v36 }
 0x65f   :  { %2341 = vmatmul.f32.gmra.mxu1 %v3906_v26  ;;  %2510 = vmatpush.msrb.mxu2 %v3956_v37 }
 0x660   :  { %2617 = vmatpush.msra.mxu1 %v3960_v39 }
 0x661   :  { %2513 = vmatpush.msrb.mxu2 %v3965_v40 }
 0x663   :  { %2228 = vmatmul.f32.gmra.mxu2 %v3923_v29  ;;  %2403 = vmatmul.f32.vlgmr.msra.gmra.mxu3 %v3848_v13 }
 0x664   :  { %2516 = vmatpush.msrb.mxu2 %v3976_v43  ;;  %2681 = vmatpush.msra.mxu3 %v2680_v20 }
 0x665   :  { %2436 = vmatmul.f32.vlgmr.msrb.gmra.mxu0 %v3880_v4 }
 0x666   :  { %2687 = vmatpush.msra.mxu3 %v2686_v27  ;;  %2723 = vmatpush.msrb.mxu0 %v4027_v60 }
 0x667   :  { %2485 = vmatmul.f32.vlgmr.msrb.gmra.mxu1 %v3848_v13 }
 0x668   :  { %2693 = vmatpush.msra.mxu3 %v2692_v33  ;;  %2726 = vmatpush.msrb.mxu0 %v4036_v18 }
 0x669   :  { %2757 = vmatpush.msrb.mxu1 %v4020_v55 }
 0x66a   :  { %2699 = vmatpush.msra.mxu3 %v2698_v3  ;;  %2729 = vmatpush.msrb.mxu0 %v4044_v24 }
 0x66b   :  { %2374 = vmatmul.f32.vlgmr.msra.gmra.mxu2 %v3848_v13  ;;  %2407 = vmatmul.f32.gmra.mxu3 %v3878_v1 }
 0x66c   :  { %2759 = vmatpush.msrb.mxu1 %v4029_v0  ;;  %2640 = vmatpush.msra.mxu2 %v4020_v55 }
 0x66d   :  { %2444 = vmatmul.f32.gmra.mxu0 %v3923_v29 }
 0x66e   :  { %2732 = vmatpush.msrb.mxu0 %v4055_v9  ;;  %2761 = vmatpush.msrb.mxu1 %v4038_v21 }
 0x66f   :  { %2489 = vmatmul.f32.gmra.mxu1 %v3878_v1  ;;  %2642 = vmatpush.msra.mxu2 %v4029_v0 }
 0x670   :  { %2763 = vmatpush.msrb.mxu1 %v4046_v12 }
 0x671   :  { %2644 = vmatpush.msra.mxu2 %v4038_v21 }
 0x673   :  { %2378 = vmatmul.f32.gmra.mxu2 %v3878_v1  ;;  %2551 = vmatmul.f32.vlgmr.msrb.gmra.mxu3 %v3859_v54 }
 0x674   :  { %2646 = vmatpush.msra.mxu2 %v4046_v12  ;;  %2827 = vmatpush.msrb.mxu3 %v4020_v55 }
 0x675   :  { %2590 = vmatmul.f32.vlgmr.msra.gmra.mxu0 %v3848_v13 }
 0x676   :  { %2829 = vmatpush.msrb.mxu3 %v4029_v0 }
 0x677   :  { %2619 = vmatmul.f32.vlgmr.msra.gmra.mxu1 %v3848_v13 }
 0x678   :  { %2831 = vmatpush.msrb.mxu3 %v4038_v21 }
 0x67a   :  { %2833 = vmatpush.msrb.mxu3 %v4046_v12 }
 0x67b   :  { %2519 = vmatmul.f32.vlgmr.msrb.gmra.mxu2 %v3851_v49  ;;  %2557 = vmatmul.f32.gmra.mxu3 %v3906_v26 }
 0x67c   :  { %2792 = vmatpush.msrb.mxu2 %v2678_v2 }
 0x67d   :  { %2594 = vmatmul.f32.gmra.mxu0 %v3878_v1 }
 0x67e   :  { %2796 = vmatpush.msrb.mxu2 %v2684_v14 }
 0x67f   :  { %2623 = vmatmul.f32.gmra.mxu1 %v3878_v1 }
 0x680   :  { %2800 = vmatpush.msrb.mxu2 %v2690_v19 }
 0x682   :  { %2804 = vmatpush.msrb.mxu2 %v2696_v7 }
 0x683   :  { %2524 = vmatmul.f32.gmra.mxu2 %v3891_v22  ;;  %2701 = vmatmul.f32.vlgmr.msra.gmra.mxu3 %v3848_v13 }
 0x685   :  { %2735 = vmatmul.f32.vlgmr.msrb.gmra.mxu0 %v3851_v49 }
 0x687   :  { %2767 = vmatmul.f32.vlgmr.msrb.gmra.mxu1 %v3859_v54 }
 0x68b   :  { %2652 = vmatmul.f32.vlgmr.msra.gmra.mxu2 %v3880_v4  ;;  %2705 = vmatmul.f32.gmra.mxu3 %v3878_v1 }
 0x68d   :  { %2740 = vmatmul.f32.gmra.mxu0 %v3891_v22 }
 0x68f   :  { %2773 = vmatmul.f32.gmra.mxu1 %v3906_v26 }
 0x691   :  { %v4133_v50 = vpop.permute.xlu2 %3227 }
 0x692   :  { %v3230_v55 = vunpack.i.h.bf16 %v4133_v50 }
 0x693   :  { %2660 = vmatmul.f32.gmra.mxu2 %v3923_v29  ;;  %2835 = vmatmul.f32.vlgmr.msrb.gmra.mxu3 %v3848_v13 }
 0x69b   :  { %2806 = vmatmul.f32.vlgmr.msrb.gmra.mxu2 %v3848_v13  ;;  %2839 = vmatmul.f32.gmra.mxu3 %v3878_v1 }
 0x6a2   :  { %v1872_v17 = vpop.f32.mrf.mxu0 }
 0x6a3   :  { %2810 = vmatmul.f32.gmra.mxu2 %v3878_v1 }
 0x6a4   :  { %v1904_v44 = vpop.f32.mrf.mxu1  ;;  %v4135_v61 = vpop.permute.xlu1 %3233 }
 0x6a5   :  { %v3235_v60 = vunpack.i.l.bf16 %v4135_v61 }
 0x6a6   :  { %v1838_v49 = vpop.f32.mrf.mxu3 }
 0x6aa   :  { %v1877_v54 = vpop.f32.mrf.mxu0 }
 0x6ac   :  { %v1910_v4 = vpop.f32.mrf.mxu1 }
 0x6ae   :  { %v1789_v6 = vpop.f32.mrf.mxu2  ;;  %v1842_v34 = vpop.f32.mrf.mxu3 }
 0x6af   :  { %v1839_v22 = vadd.f32 %v1838_v49, %v1789_v6 }
 0x6b1   :  { %v1873_v35 = vadd.f32 %v1872_v17, %v1839_v22 }
 0x6b2   :  { %v2005_v26 = vpop.f32.mrf.mxu0 }
 0x6b3   :  { %v1905_v36 = vadd.f32 %v1904_v44, %v1873_v35 }
 0x6b4   :  { %v2054_v29 = vpop.f32.mrf.mxu1 }
 0x6b5   :  { %v2055_v53 = vadd.f32 %v2054_v29, %v2005_v26 }
 0x6b6   :  { %v1797_v37 = vpop.f32.mrf.mxu2  ;;  %v1972_v5 = vpop.f32.mrf.mxu3 }
 0x6b7   :  { %v1843_v38 = vadd.f32 %v1842_v34, %v1797_v37  ;;  %v3239_v35 = vpop.permute.xlu2 %3238  ;;  %v2921_v37 = vld [vmem:[#allocation7] sm:$0xff] }
 0x6b9   :  { %v1878_v13 = vadd.f32 %v1877_v54, %v1843_v38  ;;  %v3240_v38 = vunpack.i.l.bf16 %v3239_v35 }
 0x6ba   :  { %v2013_v39 = vpop.f32.mrf.mxu0 }
 0x6bb   :  { %v1911_v40 = vadd.f32 %v1910_v4, %v1878_v13 }
 0x6bc   :  { %v2058_v8 = vpop.f32.mrf.mxu1 }
 0x6bd   :  { %v2059_v15 = vadd.f32 %v2058_v8, %v2013_v39  ;;  %v2935_v8 = vsel %vm1537_vm14, %v2921_v37, 0 }
 0x6be   :  { %v1943_v41 = vpop.f32.mrf.mxu2  ;;  %v1976_v1 = vpop.f32.mrf.mxu3 }
 0x6bf   :  { %v1944_v42 = vadd.f32 %v1943_v41, %v1905_v36 }
 0x6c1   :  { %v1973_v43 = vadd.f32 %v1972_v5, %v1944_v42  ;;  %v3222_v42 = vpop.permute.xlu0 %3221 }
 0x6c2   :  { %v2159_v11 = vpop.f32.mrf.mxu0 }
 0x6c3   :  { %v2859_v21 = vmul.f32 %v3230_v55, %v1973_v43  ;;  %v3241_v43 = vunpack.i.h.bf16 %v3239_v35 }
 0x6c4   :  { %v2188_v45 = vpop.f32.mrf.mxu1 }
 0x6c6   :  { %v1947_v46 = vpop.f32.mrf.mxu2  ;;  %v2120_v47 = vpop.f32.mrf.mxu3 }
 0x6c7   :  { %v1948_v51 = vadd.f32 %v1947_v46, %v1911_v40  ;;  %v3224_v46 = vunpack.i.h.bf16 %v3222_v42 }
 0x6c9   :  { %v4131_v52 = vadd.f32 %v1976_v1, %v1948_v51 }
 0x6ca   :  { %v2163_v57 = vpop.f32.mrf.mxu0 }
 0x6cc   :  { %v2192_v56 = vpop.f32.mrf.mxu1 }
 0x6ce   :  { %v2088_v58 = vpop.f32.mrf.mxu2  ;;  %v2126_v48 = vpop.f32.mrf.mxu3 }
 0x6cf   :  { %v2089_v59 = vadd.f32 %v2088_v58, %v2055_v53 }
 0x6d1   :  { %v2121_v62 = vadd.f32 %v2120_v47, %v2089_v59  ;;  %v3229_v59 = vunpack.i.l.bf16 %v4133_v50  ;;  %v3236_v50 = vunpack.i.h.bf16 %v4135_v61 }
 0x6d2   :  { %v2304_v23 = vpop.f32.mrf.mxu0 }
 0x6d3   :  { %v2160_v63 = vadd.f32 %v2159_v11, %v2121_v62 }
 0x6d4   :  { %v2336_v12 = vpop.f32.mrf.mxu1 }
 0x6d5   :  { %v2189_v0 = vadd.f32 %v2188_v45, %v2160_v63 }
 0x6d6   :  { %v2093_v16 = vpop.f32.mrf.mxu2  ;;  %v2270_v18 = vpop.f32.mrf.mxu3 }
 0x6d7   :  { %v2877_v2 = vmul.f32 %v3235_v60, %v2189_v0  ;;  %v2094_v44 = vadd.f32 %v2093_v16, %v2059_v15  ;;  %v2922_v0 = vld [vmem:[#allocation7 + $0x8] sm:$0xf]  ;;  %v2923_v15 = vsel %vm1537_vm14, %v2921_v37, 0.0 }
 0x6d8   :  { %2924 = vadd.xlane.f32.xlu1 %v2923_v15 }
 0x6d9   :  { %v2879_v24 = vadd.f32 %v2877_v2, %v2859_v21  ;;  %v2127_v6 = vadd.f32 %v2126_v48, %v2094_v44  ;;  %v4140_v48 = vand.u32 4294901760, %v2935_v8 }
 0x6da   :  { %v2309_v28 = vpop.f32.mrf.mxu0 }
 0x6db   :  { %v2164_v40 = vadd.f32 %v2163_v57, %v2127_v6  ;;  %v3223_v57 = vunpack.i.l.bf16 %v3222_v42 }
 0x6dc   :  { %v2342_v19 = vpop.f32.mrf.mxu1 }
 0x6dd   :  { %v2193_v51 = vadd.f32 %v2192_v56, %v2164_v40 }
 0x6de   :  { %v2221_v14 = vpop.f32.mrf.mxu2  ;;  %v2274_v9 = vpop.f32.mrf.mxu3 }
 0x6df   :  { %v2271_v32 = vadd.f32 %v2270_v18, %v2221_v14  ;;  %v2878_v21 = vmul.f32 %v3224_v46, %v2193_v51  ;;  %v2938_v14 = vsel %vm1537_vm14, %v2922_v0, 0 }
 0x6e1   :  { %v2305_v3 = vadd.f32 %v2304_v23, %v2271_v32  ;;  %v2962_v23 = vsub.f32 %v2935_v8, %v4140_v48 }
 0x6e2   :  { %v2437_v20 = vpop.f32.mrf.mxu0 }
 0x6e3   :  { %v2337_v54 = vadd.f32 %v2336_v12, %v2305_v3 }
 0x6e4   :  { %v2486_v25 = vpop.f32.mrf.mxu1 }
 0x6e5   :  { %v2487_v34 = vadd.f32 %v2486_v25, %v2437_v20  ;;  %v2963_v25 = vand.u32 4294901760, %v2962_v23 }
 0x6e6   :  { %v2229_v31 = vpop.f32.mrf.mxu2  ;;  %v2404_v7 = vpop.f32.mrf.mxu3 }
 0x6e7   :  { %v2275_v49 = vadd.f32 %v2274_v9, %v2229_v31  ;;  %v2860_v9 = vmul.f32 %v3223_v57, %v4131_v52 }
 0x6e9   :  { %v2310_v22 = vadd.f32 %v2309_v28, %v2275_v49 }
 0x6ea   :  { %v2445_v10 = vpop.f32.mrf.mxu0 }
 0x6eb   :  { %v2343_v41 = vadd.f32 %v2342_v19, %v2310_v22 }
 0x6ec   :  { %v2490_v17 = vpop.f32.mrf.mxu1 }
 0x6ed   :  { %v2491_v53 = vadd.f32 %v2490_v17, %v2445_v10  ;;  %v2964_v10 = vsub.f32 %v2962_v23, %v2963_v25 }
 0x6ee   :  { %v2375_v27 = vpop.f32.mrf.mxu2  ;;  %v2408_v33 = vpop.f32.mrf.mxu3 }
 0x6ef   :  { %v2376_v4 = vadd.f32 %v2375_v27, %v2337_v54  ;;  %v2965_v44 = vand.u32 4294901760, %v2964_v10 }
 0x6f1   :  { %v2405_v5 = vadd.f32 %v2404_v7, %v2376_v4  ;;  %v2880_v7 = vadd.f32 %v2878_v21, %v2860_v9 }
 0x6f2   :  { %v2591_v13 = vpop.f32.mrf.mxu0 }
 0x6f3   :  { %v2897_v47 = vmul.f32 %v3240_v38, %v2405_v5 }
 0x6f4   :  { %v2620_v39 = vpop.f32.mrf.mxu1 }
 0x6f5   :  { %v2899_v16 = vadd.f32 %v2897_v47, %v2879_v24  ;;  %v2969_v24 = vand.u32 4294901760, %v2938_v14 }
 0x6f6   :  { %v2379_v30 = vpop.f32.mrf.mxu2  ;;  %v2552_v26 = vpop.f32.mrf.mxu3 }
 0x6f7   :  { %v2380_v11 = vadd.f32 %v2379_v30, %v2343_v41  ;;  %v2970_v30 = vsub.f32 %v2938_v14, %v2969_v24 }
 0x6f9   :  { %v2409_v55 = vadd.f32 %v2408_v33, %v2380_v11  ;;  %v2971_v49 = vand.u32 4294901760, %v2970_v30 }
 0x6fa   :  { %v2595_v12 = vpop.f32.mrf.mxu0 }
 0x6fb   :  { %v2898_v28 = vmul.f32 %v3229_v59, %v2409_v55 }
 0x6fc   :  { %v2624_v31 = vpop.f32.mrf.mxu1 }
 0x6fd   :  { %v2900_v32 = vadd.f32 %v2898_v28, %v2880_v7 }
 0x6fe   :  { %v2520_v36 = vpop.f32.mrf.mxu2  ;;  %v2558_v18 = vpop.f32.mrf.mxu3 }
 0x6ff   :  { %v2521_v29 = vadd.f32 %v2520_v36, %v2487_v34  ;;  %v2972_v34 = vsub.f32 %v2970_v30, %v2971_v49 }
 0x701   :  { %v2553_v1 = vadd.f32 %v2552_v26, %v2521_v29  ;;  %v2927_v26 = vsel %vm2926_vm9, %v2922_v0, 0.0  ;;  %v2973_v29 = vand.u32 4294901760, %v2972_v34 }
 0x702   :  { %2928 = vadd.xlane.f32.xlu2 %v2927_v26 }
 0x703   :  { %v2592_v45 = vadd.f32 %v2591_v13, %v2553_v1  ;;  %v2736_v13 = vpop.f32.mrf.mxu0 }
 0x704   :  { %v2768_v1 = vpop.f32.mrf.mxu1 }
 0x705   :  { %v2621_v58 = vadd.f32 %v2620_v39, %v2592_v45 }
 0x706   :  { %v2525_v62 = vpop.f32.mrf.mxu2  ;;  %v2702_v38 = vpop.f32.mrf.mxu3 }
 0x707   :  { %v2917_v63 = vmul.f32 %v3241_v43, %v2621_v58  ;;  %v2526_v60 = vadd.f32 %v2525_v62, %v2491_v53 }
 0x709   :  { %v2559_v2 = vadd.f32 %v2558_v18, %v2526_v60  ;;  %v2919_v56 = vadd.f32 %v2917_v63, %v2899_v16 }
 0x70b   :  { %v2596_v19 = vadd.f32 %v2595_v12, %v2559_v2  ;;  %v2959_v27 = vand.u32 4294901760, %v2919_v56  ;;  %v2741_v39 = vpop.f32.mrf.mxu0 }
 0x70c   :  { %v2774_v43 = vpop.f32.mrf.mxu1 }
 0x70d   :  { %v2625_v20 = vadd.f32 %v2624_v31, %v2596_v19  ;;  %v2999_v17 = vsub.f32 %v2919_v56, %v2959_v27 }
 0x70e   :  { %v2653_v5 = vpop.f32.mrf.mxu2  ;;  %v2706_v41 = vpop.f32.mrf.mxu3 }
 0x70f   :  { %v2918_v33 = vmul.f32 %v3236_v50, %v2625_v20  ;;  %v3000_v4 = vand.u32 4294901760, %v2999_v17 }
 0x711   :  { %v2920_v3 = vadd.f32 %v2918_v33, %v2900_v32  ;;  %v3001_v35 = vsub.f32 %v2999_v17, %v3000_v4 }
 0x713   :  { %v2941_v52 = vsel %vm1544_vm0, %v2920_v3, 0  ;;  %v3002_v37 = vand.u32 4294901760, %v3001_v35 }
 0x714   :  { %v2957_v61 = vand.u32 4294901760, %v2941_v52 }
 0x716   :  { %2958 = vmatpush.msra.mxu0 %v2957_v61  ;;  %3059 = vmatpush.msra.mxu3 %v2957_v61  ;;  %v2993_v54 = vsub.f32 %v2941_v52, %v2957_v61  ;;  %v2661_v40 = vpop.f32.mrf.mxu2  ;;  %v2836_v42 = vpop.f32.mrf.mxu3 }
 0x717   :  { %v2707_v18 = vadd.f32 %v2706_v41, %v2661_v40 }
 0x718   :  { %2960 = vmatpush.msra.mxu0 %v2959_v27  ;;  %3029 = vmatpush.msra.mxu2 %v2993_v54  ;;  %v2994_v6 = vand.u32 4294901760, %v2993_v54 }
 0x719   :  { %3061 = vmatpush.msra.mxu3 %v2959_v27  ;;  %2966 = vmatmul.f32.vlgmr.msra.gmra.mxu0 %v2965_v44  ;;  %v2742_v19 = vadd.f32 %v2741_v39, %v2707_v18 }
 0x71a   :  { %3032 = vmatpush.msra.mxu2 %v2999_v17  ;;  %3092 = vmatpush.msrb.mxu0 %v2994_v6  ;;  %v2995_v22 = vsub.f32 %v2993_v54, %v2994_v6 }
 0x71b   :  { %3035 = vmatmul.f32.vlgmr.msra.gmra.mxu2 %v2962_v23  ;;  %3065 = vmatmul.f32.vlgmr.msra.gmra.mxu3 %v2963_v25  ;;  %v2775_v32 = vadd.f32 %v2774_v43, %v2742_v19 }
 0x71c   :  { %3096 = vmatpush.msrb.mxu0 %v3000_v4  ;;  %v2996_v36 = vand.u32 4294901760, %v2995_v22 }
 0x71e   :  { %2997 = vmatpush.msra.mxu1 %v2996_v36  ;;  %v2807_v8 = vpop.f32.mrf.mxu2  ;;  %v2840_v46 = vpop.f32.mrf.mxu3 }
 0x720   :  { %3003 = vmatpush.msra.mxu1 %v3002_v37 }
 0x721   :  { %3005 = vmatmul.f32.vlgmr.msra.gmra.mxu1 %v4140_v48  ;;  %2974 = vmatmul.f32.gmra.mxu0 %v2973_v29 }
 0x722   :  { %3121 = vmatpush.msrb.mxu1 %v2957_v61 }
 0x723   :  { %3040 = vmatmul.f32.gmra.mxu2 %v2970_v30  ;;  %3071 = vmatmul.f32.gmra.mxu3 %v2971_v49 }
 0x724   :  { %3123 = vmatpush.msrb.mxu1 %v2959_v27 }
 0x726   :  { %v2811_v45 = vpop.f32.mrf.mxu2 }
 0x727   :  { %v2812_v10 = vadd.f32 %v2811_v45, %v2775_v32 }
 0x729   :  { %3009 = vmatmul.f32.gmra.mxu1 %v2969_v24  ;;  %3098 = vmatmul.f32.vlgmr.msrb.gmra.mxu0 %v4140_v48  ;;  %v2841_v44 = vadd.f32 %v2840_v46, %v2812_v10 }
 0x731   :  { %3125 = vmatmul.f32.vlgmr.msrb.gmra.mxu1 %v4140_v48  ;;  %3102 = vmatmul.f32.gmra.mxu0 %v2969_v24  ;;  %v2703_v48 = vadd.f32 %v2702_v38, %v2653_v5 }
 0x733   :  { %v2737_v63 = vadd.f32 %v2736_v13, %v2703_v48 }
 0x735   :  { %v2769_v21 = vadd.f32 %v2768_v1, %v2737_v63 }
 0x737   :  { %v2808_v14 = vadd.f32 %v2807_v8, %v2769_v21 }
 0x739   :  { %3129 = vmatmul.f32.gmra.mxu1 %v2969_v24  ;;  %v2837_v25 = vadd.f32 %v2836_v42, %v2808_v14 }
 0x74b   :  { %v2925_v53 = vpop.xlane.xlu1 %2924 }
 0x74c   :  { %v2930_v62 = vmax.f32 %v2925_v53, 1.0 }
 0x74e   :  { %3252 = vrcp.f32 %v2930_v62 }
 0x754   :  { %v3253_v50 = vpop.eup %3252 }
 0x775   :  { %v2929_v16 = vpop.xlane.xlu2 %2928 }
 0x776   :  { %v2931_v12 = vmax.f32 %v2929_v16, 1.0 }
 0x778   :  { %3254 = vrcp.f32 %v2931_v12 }
 0x77e   :  { %v3255_v17 = vpop.eup %3254 }
 0x796   :  { %v2967_v11 = vpop.f32.mrf.mxu0 }
 0x79e   :  { %v3006_v47 = vpop.f32.mrf.mxu1  ;;  %v2975_v51 = vpop.f32.mrf.mxu0 }
 0x79f   :  { %v3036_v58 = vpop.f32.mrf.mxu2  ;;  %v3007_v59 = vadd.f32 %v3006_v47, %v2967_v11  ;;  %v3066_v55 = vpop.f32.mrf.mxu3 }
 0x7a1   :  { %v3037_v60 = vadd.f32 %v3036_v58, %v3007_v59 }
 0x7a3   :  { %v3067_v23 = vadd.f32 %v3066_v55, %v3037_v60 }
 0x7a6   :  { %v3010_v57 = vpop.f32.mrf.mxu1  ;;  %v3099_v0 = vpop.f32.mrf.mxu0 }
 0x7a7   :  { %v3011_v2 = vadd.f32 %v3010_v57, %v2975_v51  ;;  %v3041_v56 = vpop.f32.mrf.mxu2  ;;  %v3100_v9 = vadd.f32 %v3099_v0, %v3067_v23  ;;  %v3072_v20 = vpop.f32.mrf.mxu3 }
 0x7a9   :  { %v3042_v7 = vadd.f32 %v3041_v56, %v3011_v2 }
 0x7ab   :  { %v3073_v3 = vadd.f32 %v3072_v20, %v3042_v7 }
 0x7ae   :  { %v3126_v28 = vpop.f32.mrf.mxu1  ;;  %v3103_v27 = vpop.f32.mrf.mxu0 }
 0x7af   :  { %v3127_v31 = vadd.f32 %v3126_v28, %v3100_v9  ;;  %v3104_v15 = vadd.f32 %v3103_v27, %v3073_v3 }
 0x7b1   :  { %v3133_v24 = vmul.f32 %v3253_v50, %v3127_v31 }
 0x7b3   :  { %v3135_v33 = vadd.f32 %v3133_v24, %v2837_v25 }
 0x7b5   :  { %v3137_v30 = vmax.f32 %v3135_v33, 0.0 }
 0x7b6   :  { %v3130_v52 = vpop.f32.mrf.mxu1 }
 0x7b7   :  { %3139 = vst [vmem:[#allocation14] sm:$0xff] %v3137_v30  ;;  %v3131_v61 = vadd.f32 %v3130_v52, %v3104_v15 }
 0x7b9   :  { %v3134_v49 = vmul.f32 %v3255_v17, %v3131_v61 }
 0x7bb   :  { %v3136_v54 = vadd.f32 %v3134_v49, %v2841_v44 }
 0x7bd   :  { %v3138_v4 = vmax.f32 %v3136_v54, 0.0 }
 0x7bf   :  { %3140 = vst [vmem:[#allocation14 + $0x8] sm:$0xf] %v3138_v4 }
 0x7c0   :  { %3164 = dma.vmem_to_hbm [thread:$0]  %s3157_s27, 256, %s3159_s5, [#allocation15], %s3461_s16, %s3461_s16, %s3462_s17  }
 0x7c1   :  { %3456 = dma.done.wait [#allocation4], 128  }
 0x7c2   :  { %3457 = vsyncadd [#allocation4], 4294967168 }
 0x7c3   :  { %3458 = dma.done.wait [#allocation15], 256  }
 0x7c4   :  { %3459 = vsyncadd [#allocation15], 4294967040 }
 0x7c5   :  { %3173 = vsyncpa [#allocation3], 1 }
 0x7c6   :  { %3174 = vsyncpa [#allocation6], 1 }
 0x7c7   :  { %3175 = vsyncpa [#allocation9], 1 }
 0x7c8   :  { %3176 = vsyncpa [#allocation12], 1 }
 0x7c9   :  { %3177 = vsyncpa [#allocation4], 1 }
 0x7ca   :  { %3178 = vsyncpa [#allocation15], 1 }

</bundles_post_ra>
